<compile_context>
chip_gen: v7x
topology: tpu7x:2x2x1
jax: 0.10.0
libtpu: 0.0.40
codegen_flags: <defaults>
</compile_context>

<pallas_src>
import math
import jax
import jax.numpy as jnp
from jax.experimental import pallas as pl
from jax.experimental.pallas import tpu as pltpu


# -----------------------------------------------------------------------------
# Fused kernel (graph branch on grid step 0, text branch on grid step 1)
# -----------------------------------------------------------------------------
def make_fused_kernel(b, s, g, rows):
    def kernel(a_ref, x_ref, w1_ref, w23_ref, gpb_ref, pool_ref,
               mh1w_ref, mh2w_ref,
               emb_ref, bias2d_ref, wqkvo_ref, wf1_ref, wf2_ref, pv_ref,
               o_ref):
        branch = pl.program_id(0)

        def store(res):
            if res.shape[0] < rows:                    # static pad only
                res = jnp.pad(res, ((0, rows - res.shape[0]), (0, 0)))
            o_ref[0] = res

        def layer_norm(z, gamma, beta, eps):
            mu = jnp.mean(z, axis=-1, keepdims=True)
            var = jnp.mean((z - mu) ** 2, axis=-1, keepdims=True)
            return (z - mu) * jax.lax.rsqrt(var + eps) * gamma + beta

        # ----- graph branch: 3x(GCN -> BatchNorm -> ReLU) + mean-pool + MLP --
        @pl.when(branch == 0)
        def _graph():
            a = a_ref[...]                              # (N, N) f32
            pb = gpb_ref[...]                           # (11, C) f32 slab
            w23 = w23_ref[...]                          # (2C, C) bf16
            c = w23_ref.shape[1]

            def gcn_bn_relu(h, w, bias, gamma, beta):
                xw = jnp.dot(h.astype(jnp.bfloat16), w,
                             preferred_element_type=jnp.float32)
                z = jnp.dot(a, xw, preferred_element_type=jnp.float32) + bias
                mean = jnp.mean(z, axis=0, keepdims=True)
                var = jnp.mean((z - mean) ** 2, axis=0, keepdims=True)
                zn = (z - mean) * jax.lax.rsqrt(var + 1e-5) * gamma + beta
                return jnp.maximum(zn, 0.0)

            h = gcn_bn_relu(x_ref[...], w1_ref[...], pb[0:1], pb[1:2], pb[2:3])
            h = gcn_bn_relu(h, w23[:c], pb[3:4], pb[4:5], pb[5:6])
            h = gcn_bn_relu(h, w23[c:], pb[6:7], pb[7:8], pb[8:9])

            # global_mean_pool as a matmul with the normalized assignment matrix
            pooled = jnp.dot(pool_ref[...], h, preferred_element_type=jnp.float32)
            hid = jnp.maximum(
                jnp.dot(pooled.astype(jnp.bfloat16), mh1w_ref[...],
                        preferred_element_type=jnp.float32) + pb[9:10], 0.0)
            res = (jnp.dot(hid.astype(jnp.bfloat16), mh2w_ref[...],
                           preferred_element_type=jnp.float32) + pb[10:11])
            store(res)

        # ----- text branch: 1-layer transformer encoder, CLS rows only -------
        @pl.when(branch == 1)
        def _text():
            pv = pv_ref[...]                            # (12, H) f32 slab
            hdim = emb_ref.shape[1]

            xf = layer_norm(emb_ref[...], pv[0:1], pv[1:2], 1e-12)   # (B*S, H)
            xb = xf.astype(jnp.bfloat16)
            w = wqkvo_ref[...]                                       # (4H, H) bf16
            q = jnp.dot(xb, w[0:hdim],
                        preferred_element_type=jnp.float32) + pv[2:3]
            k = jnp.dot(xb, w[hdim:2 * hdim],
                        preferred_element_type=jnp.float32) + pv[3:4]
            v = jnp.dot(xb, w[2 * hdim:3 * hdim],
                        preferred_element_type=jnp.float32) + pv[4:5]

            # flat attention: one (B*S, B*S) score tile, block-diagonal +
            # key-padding handled by the precomputed additive bias.
            scale = 1.0 / math.sqrt(hdim)
            scores = (jax.lax.dot_general(
                q, k, (((1,), (1,)), ((), ())),
                preferred_element_type=jnp.float32) * scale + bias2d_ref[...])
            m = jnp.max(scores, axis=-1, keepdims=True)
            e = jnp.exp(scores - m)
            p = e / jnp.sum(e, axis=-1, keepdims=True)   # exact divide
            ctx = jnp.dot(p, v, preferred_element_type=jnp.float32)
            attn = (jnp.dot(ctx.astype(jnp.bfloat16), w[3 * hdim:4 * hdim],
                            preferred_element_type=jnp.float32) + pv[5:6])

            h1 = layer_norm(xf + attn, pv[6:7], pv[7:8], 1e-12)      # (B*S, H)

            # only the CLS token is consumed downstream: slice it now and run
            # the FFN + final LayerNorm on B rows only.
            cls1 = h1.reshape(b, s, hdim)[:, 0, :]                   # (B, H)
            ff = (jnp.dot(cls1.astype(jnp.bfloat16), wf1_ref[...],
                          preferred_element_type=jnp.float32) + pv[8:9])
            ff = 0.5 * ff * (1.0 + jnp.tanh(0.7978845608028654 *
                                            (ff + 0.044715 * ff * ff * ff)))
            ff = (jnp.dot(ff.astype(jnp.bfloat16), wf2_ref[...],
                          preferred_element_type=jnp.float32) + pv[9:10])
            store(layer_norm(cls1 + ff, pv[10:11], pv[11:12], 1e-12))

    return kernel


# -----------------------------------------------------------------------------
# pallas_call wrapper (single launch for the whole model forward)
# -----------------------------------------------------------------------------
def _full(shape):
    n = len(shape)

    def idx(i):
        return (0,) * n

    return pl.BlockSpec(shape, idx)


def model_forward(gp, tp, graph_x, a_norm, pool_mat, input_ids, attention_mask):
    bsz, seq = input_ids.shape
    hidden = tp["pos_emb"].shape[1]
    g = pool_mat.shape[0]
    nout = gp["mh2_w"].shape[1]
    assert nout == hidden, "shared output slab requires nout == hidden"
    rows = max(g, bsz)

    # token-embedding gather + positional add stay in XLA glue (vocab-sized
    # table); everything downstream is one fused Pallas call.
    emb = (jnp.take(tp["tok_emb"], input_ids.reshape(-1), axis=0)
           .reshape(bsz, seq, hidden)
           + tp["pos_emb"][None, :seq, :]).reshape(bsz * seq, hidden)

    # additive attention bias: 0 for (same sequence AND valid key), else -1e9
    key_mask = attention_mask.astype(jnp.float32).reshape(-1)
    blockdiag = jnp.kron(jnp.eye(bsz, dtype=jnp.float32),
                         jnp.ones((seq, seq), jnp.float32))
    bias2d = (blockdiag * key_mask[None, :] - 1.0) * 1e9

    args = (a_norm, graph_x, gp["w1"], gp["w23"], gp["pb"], pool_mat,
            gp["mh1_w"], gp["mh2_w"],
            emb, bias2d, tp["wqkvo"], tp["wf1"], tp["wf2"], tp["pv"])

    out = pl.pallas_call(
        make_fused_kernel(bsz, seq, g, rows),
        out_shape=jax.ShapeDtypeStruct((2, rows, hidden), jnp.float32),
        grid=(2,),
        in_specs=[_full(a.shape) for a in args],
        out_specs=pl.BlockSpec((1, rows, hidden), lambda i: (i, 0, 0)),
        compiler_params=pltpu.CompilerParams(
            dimension_semantics=("parallel",)),
    )(*args)

    graph_encoded = out[0, :g, :]
    text_encoded = out[1, :bsz, :]
    return graph_encoded, text_encoded


# -----------------------------------------------------------------------------
# Parameter init (bf16 weight slabs, f32 bias/norm slabs)
# -----------------------------------------------------------------------------
def init_params(key, num_node_features, nout, nhid, ghc, vocab, seq_len, hidden, ffn):
    assert ghc == nhid == nout, "bias slab packing assumes equal widths"
    assert ffn == hidden, "bias slab packing assumes ffn == hidden"
    ks = jax.random.split(key, 16)
    k = iter(ks)

    def lin(kk, fin, fout):
        w = jax.random.normal(kk, (fin, fout), jnp.float32) * (1.0 / math.sqrt(fin))
        return w.astype(jnp.bfloat16)

    def zeros(n, w):
        return jnp.zeros((n, w), jnp.float32)

    def ones(n, w):
        return jnp.ones((n, w), jnp.float32)

    # ---- graph encoder ----
    w2 = lin(next(k), ghc, ghc)
    w3 = lin(next(k), ghc, ghc)
    # pb rows: [conv_b, bn_gamma, bn_beta] x 3 layers + [mh1_b, mh2_b]
    pb = jnp.concatenate([zeros(1, ghc), ones(1, ghc), zeros(1, ghc)] * 3
                         + [zeros(2, ghc)], axis=0)
    gp = {
        "w1": lin(next(k), num_node_features, ghc),
        "w23": jnp.concatenate([w2, w3], axis=0),           # (2*GHC, GHC) bf16
        "pb": pb,                                            # (11, GHC) f32
        "mh1_w": lin(next(k), ghc, nhid),
        "mh2_w": lin(next(k), nhid, nout),
    }

    # ---- text encoder (single-layer single-head transformer stand-in) ----
    wq = lin(next(k), hidden, hidden)
    wk = lin(next(k), hidden, hidden)
    wv = lin(next(k), hidden, hidden)
    wo = lin(next(k), hidden, hidden)
    # pv rows: [emb_g, emb_b, bq, bk, bv, bo, g1, be1, bf1, bf2, g2, be2]
    pv = jnp.concatenate([
        ones(1, hidden), zeros(1, hidden),       # embedding LayerNorm
        zeros(4, hidden),                        # bq bk bv bo
        ones(1, hidden), zeros(1, hidden),       # g1 be1
        zeros(1, ffn),                           # bf1
        zeros(1, hidden),                        # bf2
        ones(1, hidden), zeros(1, hidden),       # g2 be2
    ], axis=0)
    tp = {
        "tok_emb": jax.random.normal(next(k), (vocab, hidden), jnp.float32) * 0.02,
        "pos_emb": jax.random.normal(next(k), (seq_len, hidden), jnp.float32) * 0.02,
        "wqkvo": jnp.concatenate([wq, wk, wv, wo], axis=0),  # (4H, H) bf16
        "wf1": lin(next(k), hidden, ffn),
        "wf2": lin(next(k), ffn, hidden),
        "pv": pv,                                            # (12, H) f32
    }
    return gp, tp


# -----------------------------------------------------------------------------
# Glue: dense normalized adjacency + mean-pool matrix from graph batch
# -----------------------------------------------------------------------------
def build_graph_structs(edge_index, batch, num_nodes, num_graphs):
    a = jnp.zeros((num_nodes, num_nodes), jnp.float32)
    a = a.at[edge_index[0], edge_index[1]].set(1.0)
    a = a + jnp.eye(num_nodes, dtype=jnp.float32)             # add self loops
    deg = jnp.sum(a, axis=1)
    dinv = jax.lax.rsqrt(jnp.maximum(deg, 1e-12))
    a_norm = a * dinv[:, None] * dinv[None, :]                # D^-1/2 (A+I) D^-1/2
    onehot = (batch[None, :] == jnp.arange(num_graphs)[:, None]).astype(jnp.float32)
    counts = jnp.maximum(jnp.sum(onehot, axis=1, keepdims=True), 1.0)
    pool_mat = onehot / counts                                # mean pool per graph
    return a_norm, pool_mat


# -----------------------------------------------------------------------------
if __name__ == "__main__":
    # Small, lane-dense shapes (hidden dims are multiples of 128)
    NUM_NODE_FEATURES = 16
    GRAPH_HIDDEN = 128
    NHID = 128
    NOUT = 128
    NODES_PER_GRAPH = 8
    NUM_GRAPHS = 2
    NUM_NODES = NODES_PER_GRAPH * NUM_GRAPHS
    VOCAB = 100
    BATCH = 2
    SEQ = 8
    HIDDEN = 128
    FFN = 128

    key = jax.random.PRNGKey(0)
    kx, kids, kparams = jax.random.split(key, 3)

    # Graph batch: 2 graphs of 8 nodes each, bidirectional ring topology
    graph_x = jax.random.normal(kx, (NUM_NODES, NUM_NODE_FEATURES), jnp.float32)
    src, dst = [], []
    for gidx in range(NUM_GRAPHS):
        base = gidx * NODES_PER_GRAPH
        for i in range(NODES_PER_GRAPH):
            u, w = base + i, base + (i + 1) % NODES_PER_GRAPH
            src += [u, w]
            dst += [w, u]
    edge_index = jnp.array([src, dst], dtype=jnp.int32)
    batch_vec = jnp.repeat(jnp.arange(NUM_GRAPHS, dtype=jnp.int32), NODES_PER_GRAPH)
    a_norm, pool_mat = build_graph_structs(edge_index, batch_vec,
                                           NUM_NODES, NUM_GRAPHS)

    # Text batch (batch element 1 has 2 padded positions at the end)
    input_ids = jax.random.randint(kids, (BATCH, SEQ), 0, VOCAB, dtype=jnp.int32)
    attention_mask = jnp.ones((BATCH, SEQ), jnp.int32).at[1, 6:].set(0)

    gp, tp = init_params(kparams, NUM_NODE_FEATURES, NOUT, NHID, GRAPH_HIDDEN,
                         VOCAB, SEQ, HIDDEN, FFN)

    graph_encoded, text_encoded = jax.jit(model_forward)(
        gp, tp, graph_x, a_norm, pool_mat, input_ids, attention_mask)
    jax.block_until_ready((graph_encoded, text_encoded))

    assert graph_encoded.shape == (NUM_GRAPHS, NOUT)
    assert text_encoded.shape == (BATCH, HIDDEN)
    assert bool(jnp.all(jnp.isfinite(graph_encoded)))
    assert bool(jnp.all(jnp.isfinite(text_encoded)))
    print("KERNEL_OK")
</pallas_src>

<mosaic_0001>
module attributes {stable_mosaic.version = 11 : i64} {
  func.func @kernel(%arg0: i32, %arg1: memref<16x16xf32, #tpu.memory_space<vmem>>, %arg2: memref<16x16xf32, #tpu.memory_space<vmem>>, %arg3: memref<16x128xbf16, #tpu.memory_space<vmem>>, %arg4: memref<256x128xbf16, #tpu.memory_space<vmem>>, %arg5: memref<11x128xf32, #tpu.memory_space<vmem>>, %arg6: memref<2x16xf32, #tpu.memory_space<vmem>>, %arg7: memref<128x128xbf16, #tpu.memory_space<vmem>>, %arg8: memref<128x128xbf16, #tpu.memory_space<vmem>>, %arg9: memref<16x128xf32, #tpu.memory_space<vmem>>, %arg10: memref<16x16xf32, #tpu.memory_space<vmem>>, %arg11: memref<512x128xbf16, #tpu.memory_space<vmem>>, %arg12: memref<128x128xbf16, #tpu.memory_space<vmem>>, %arg13: memref<128x128xbf16, #tpu.memory_space<vmem>>, %arg14: memref<12x128xf32, #tpu.memory_space<vmem>>, %arg15: memref<1x2x128xf32, #tpu.memory_space<vmem>>) attributes {dimension_semantics = [#tpu.dimension_semantics<parallel>], iteration_bounds = array<i64: 2>, scalar_prefetch = 0 : i64, scratch_operands = 0 : i64, tpu.core_type = #tpu.core_type<tc>, window_params = [{pipeline_mode = #tpu.pipeline_mode<synchronous>, transform_indices = @transform_0, window_bounds = array<i64: 16, 16>}, {pipeline_mode = #tpu.pipeline_mode<synchronous>, transform_indices = @transform_1, window_bounds = array<i64: 16, 16>}, {pipeline_mode = #tpu.pipeline_mode<synchronous>, transform_indices = @transform_2, window_bounds = array<i64: 16, 128>}, {pipeline_mode = #tpu.pipeline_mode<synchronous>, transform_indices = @transform_3, window_bounds = array<i64: 256, 128>}, {pipeline_mode = #tpu.pipeline_mode<synchronous>, transform_indices = @transform_4, window_bounds = array<i64: 11, 128>}, {pipeline_mode = #tpu.pipeline_mode<synchronous>, transform_indices = @transform_5, window_bounds = array<i64: 2, 16>}, {pipeline_mode = #tpu.pipeline_mode<synchronous>, transform_indices = @transform_6, window_bounds = array<i64: 128, 128>}, {pipeline_mode = #tpu.pipeline_mode<synchronous>, transform_indices = @transform_7, window_bounds = array<i64: 128, 128>}, {pipeline_mode = #tpu.pipeline_mode<synchronous>, transform_indices = @transform_8, window_bounds = array<i64: 16, 128>}, {pipeline_mode = #tpu.pipeline_mode<synchronous>, transform_indices = @transform_9, window_bounds = array<i64: 16, 16>}, {pipeline_mode = #tpu.pipeline_mode<synchronous>, transform_indices = @transform_10, window_bounds = array<i64: 512, 128>}, {pipeline_mode = #tpu.pipeline_mode<synchronous>, transform_indices = @transform_11, window_bounds = array<i64: 128, 128>}, {pipeline_mode = #tpu.pipeline_mode<synchronous>, transform_indices = @transform_12, window_bounds = array<i64: 128, 128>}, {pipeline_mode = #tpu.pipeline_mode<synchronous>, transform_indices = @transform_13, window_bounds = array<i64: 12, 128>}, {transform_indices = @transform_14, window_bounds = array<i64: 1, 2, 128>}]} {
    %c0_i32 = arith.constant 0 : i32
    %0 = arith.cmpi eq, %arg0, %c0_i32 : i32
    %1 = arith.extui %0 : i1 to i32
    %c0_i32_0 = arith.constant 0 : i32
    %2 = arith.cmpi ne, %1, %c0_i32_0 : i32
    scf.if %2 {
      %c0 = arith.constant 0 : index
      %c0_2 = arith.constant 0 : index
      %6 = vector.load %arg1[%c0, %c0_2] : memref<16x16xf32, #tpu.memory_space<vmem>>, vector<16x16xf32>
      %c0_3 = arith.constant 0 : index
      %c0_4 = arith.constant 0 : index
      %7 = vector.load %arg5[%c0_3, %c0_4] : memref<11x128xf32, #tpu.memory_space<vmem>>, vector<11x128xf32>
      %c0_5 = arith.constant 0 : index
      %c0_6 = arith.constant 0 : index
      %8 = vector.load %arg4[%c0_5, %c0_6] : memref<256x128xbf16, #tpu.memory_space<vmem>>, vector<256x128xbf16>
      %c0_7 = arith.constant 0 : index
      %c0_8 = arith.constant 0 : index
      %9 = vector.load %arg2[%c0_7, %c0_8] : memref<16x16xf32, #tpu.memory_space<vmem>>, vector<16x16xf32>
      %c0_9 = arith.constant 0 : index
      %c0_10 = arith.constant 0 : index
      %10 = vector.load %arg3[%c0_9, %c0_10] : memref<16x128xbf16, #tpu.memory_space<vmem>>, vector<16x128xbf16>
      %11 = vector.extract_strided_slice %7 {offsets = [0, 0], sizes = [1, 128], strides = [1, 1]} : vector<11x128xf32> to vector<1x128xf32>
      %12 = vector.extract_strided_slice %7 {offsets = [1, 0], sizes = [1, 128], strides = [1, 1]} : vector<11x128xf32> to vector<1x128xf32>
      %13 = vector.extract_strided_slice %7 {offsets = [2, 0], sizes = [1, 128], strides = [1, 1]} : vector<11x128xf32> to vector<1x128xf32>
      %14 = arith.truncf %9 : vector<16x16xf32> to vector<16x16xbf16>
      %cst = arith.constant dense<0.000000e+00> : vector<16x128xf32>
      %15 = tpu.matmul %14, %10, %cst {dimension_numbers = #tpu.dot_dimension_numbers<[1], [0], [0], [1], [0, 0, 1, 1], [], []>} : vector<16x16xbf16>, vector<16x128xbf16>, vector<16x128xf32> -> vector<16x128xf32>
      %cst_11 = arith.constant dense<0.000000e+00> : vector<16x128xf32>
      %16 = tpu.matmul %6, %15, %cst_11 {dimension_numbers = #tpu.dot_dimension_numbers<[1], [0], [0], [1], [0, 0, 1, 1], [], []>} : vector<16x16xf32>, vector<16x128xf32>, vector<16x128xf32> -> vector<16x128xf32>
      %17 = vector.broadcast %11 : vector<1x128xf32> to vector<16x128xf32>
      %18 = arith.addf %16, %17 : vector<16x128xf32>
      %cst_12 = arith.constant dense<0.000000e+00> : vector<128xf32>
      %19 = vector.multi_reduction <add>, %18, %cst_12 [0] : vector<16x128xf32> to vector<128xf32>
      %20 = vector.shape_cast %19 : vector<128xf32> to vector<1x128xf32>
      %cst_13 = arith.constant 1.600000e+01 : f32
      %21 = vector.broadcast %cst_13 : f32 to vector<1x128xf32>
      %22 = arith.divf %20, %21 : vector<1x128xf32>
      %23 = vector.broadcast %22 : vector<1x128xf32> to vector<16x128xf32>
      %24 = arith.subf %18, %23 : vector<16x128xf32>
      %25 = arith.mulf %24, %24 : vector<16x128xf32>
      %cst_14 = arith.constant dense<0.000000e+00> : vector<128xf32>
      %26 = vector.multi_reduction <add>, %25, %cst_14 [0] : vector<16x128xf32> to vector<128xf32>
      %27 = vector.shape_cast %26 : vector<128xf32> to vector<1x128xf32>
      %cst_15 = arith.constant 1.600000e+01 : f32
      %28 = vector.broadcast %cst_15 : f32 to vector<1x128xf32>
      %29 = arith.divf %27, %28 : vector<1x128xf32>
      %30 = vector.broadcast %22 : vector<1x128xf32> to vector<16x128xf32>
      %31 = arith.subf %18, %30 : vector<16x128xf32>
      %cst_16 = arith.constant 9.99999974E-6 : f32
      %32 = vector.broadcast %cst_16 : f32 to vector<1x128xf32>
      %33 = arith.addf %29, %32 : vector<1x128xf32>
      %34 = math.rsqrt %33 : vector<1x128xf32>
      %35 = vector.broadcast %34 : vector<1x128xf32> to vector<16x128xf32>
      %36 = arith.mulf %31, %35 : vector<16x128xf32>
      %37 = vector.broadcast %12 : vector<1x128xf32> to vector<16x128xf32>
      %38 = arith.mulf %36, %37 : vector<16x128xf32>
      %39 = vector.broadcast %13 : vector<1x128xf32> to vector<16x128xf32>
      %40 = arith.addf %38, %39 : vector<16x128xf32>
      %cst_17 = arith.constant 0.000000e+00 : f32
      %41 = vector.broadcast %cst_17 : f32 to vector<16x128xf32>
      %42 = arith.maximumf %40, %41 : vector<16x128xf32>
      %43 = vector.extract_strided_slice %8 {offsets = [0, 0], sizes = [128, 128], strides = [1, 1]} : vector<256x128xbf16> to vector<128x128xbf16>
      %44 = vector.extract_strided_slice %7 {offsets = [3, 0], sizes = [1, 128], strides = [1, 1]} : vector<11x128xf32> to vector<1x128xf32>
      %45 = vector.extract_strided_slice %7 {offsets = [4, 0], sizes = [1, 128], strides = [1, 1]} : vector<11x128xf32> to vector<1x128xf32>
      %46 = vector.extract_strided_slice %7 {offsets = [5, 0], sizes = [1, 128], strides = [1, 1]} : vector<11x128xf32> to vector<1x128xf32>
      %47 = arith.truncf %42 : vector<16x128xf32> to vector<16x128xbf16>
      %cst_18 = arith.constant dense<0.000000e+00> : vector<16x128xf32>
      %48 = tpu.matmul %47, %43, %cst_18 {dimension_numbers = #tpu.dot_dimension_numbers<[1], [0], [0], [1], [0, 0, 1, 1], [], []>} : vector<16x128xbf16>, vector<128x128xbf16>, vector<16x128xf32> -> vector<16x128xf32>
      %cst_19 = arith.constant dense<0.000000e+00> : vector<16x128xf32>
      %49 = tpu.matmul %6, %48, %cst_19 {dimension_numbers = #tpu.dot_dimension_numbers<[1], [0], [0], [1], [0, 0, 1, 1], [], []>} : vector<16x16xf32>, vector<16x128xf32>, vector<16x128xf32> -> vector<16x128xf32>
      %50 = vector.broadcast %44 : vector<1x128xf32> to vector<16x128xf32>
      %51 = arith.addf %49, %50 : vector<16x128xf32>
      %cst_20 = arith.constant dense<0.000000e+00> : vector<128xf32>
      %52 = vector.multi_reduction <add>, %51, %cst_20 [0] : vector<16x128xf32> to vector<128xf32>
      %53 = vector.shape_cast %52 : vector<128xf32> to vector<1x128xf32>
      %cst_21 = arith.constant 1.600000e+01 : f32
      %54 = vector.broadcast %cst_21 : f32 to vector<1x128xf32>
      %55 = arith.divf %53, %54 : vector<1x128xf32>
      %56 = vector.broadcast %55 : vector<1x128xf32> to vector<16x128xf32>
      %57 = arith.subf %51, %56 : vector<16x128xf32>
      %58 = arith.mulf %57, %57 : vector<16x128xf32>
      %cst_22 = arith.constant dense<0.000000e+00> : vector<128xf32>
      %59 = vector.multi_reduction <add>, %58, %cst_22 [0] : vector<16x128xf32> to vector<128xf32>
      %60 = vector.shape_cast %59 : vector<128xf32> to vector<1x128xf32>
      %cst_23 = arith.constant 1.600000e+01 : f32
      %61 = vector.broadcast %cst_23 : f32 to vector<1x128xf32>
      %62 = arith.divf %60, %61 : vector<1x128xf32>
      %63 = vector.broadcast %55 : vector<1x128xf32> to vector<16x128xf32>
      %64 = arith.subf %51, %63 : vector<16x128xf32>
      %cst_24 = arith.constant 9.99999974E-6 : f32
      %65 = vector.broadcast %cst_24 : f32 to vector<1x128xf32>
      %66 = arith.addf %62, %65 : vector<1x128xf32>
      %67 = math.rsqrt %66 : vector<1x128xf32>
      %68 = vector.broadcast %67 : vector<1x128xf32> to vector<16x128xf32>
      %69 = arith.mulf %64, %68 : vector<16x128xf32>
      %70 = vector.broadcast %45 : vector<1x128xf32> to vector<16x128xf32>
      %71 = arith.mulf %69, %70 : vector<16x128xf32>
      %72 = vector.broadcast %46 : vector<1x128xf32> to vector<16x128xf32>
      %73 = arith.addf %71, %72 : vector<16x128xf32>
      %cst_25 = arith.constant 0.000000e+00 : f32
      %74 = vector.broadcast %cst_25 : f32 to vector<16x128xf32>
      %75 = arith.maximumf %73, %74 : vector<16x128xf32>
      %76 = vector.extract_strided_slice %8 {offsets = [128, 0], sizes = [128, 128], strides = [1, 1]} : vector<256x128xbf16> to vector<128x128xbf16>
      %77 = vector.extract_strided_slice %7 {offsets = [6, 0], sizes = [1, 128], strides = [1, 1]} : vector<11x128xf32> to vector<1x128xf32>
      %78 = vector.extract_strided_slice %7 {offsets = [7, 0], sizes = [1, 128], strides = [1, 1]} : vector<11x128xf32> to vector<1x128xf32>
      %79 = vector.extract_strided_slice %7 {offsets = [8, 0], sizes = [1, 128], strides = [1, 1]} : vector<11x128xf32> to vector<1x128xf32>
      %80 = arith.truncf %75 : vector<16x128xf32> to vector<16x128xbf16>
      %cst_26 = arith.constant dense<0.000000e+00> : vector<16x128xf32>
      %81 = tpu.matmul %80, %76, %cst_26 {dimension_numbers = #tpu.dot_dimension_numbers<[1], [0], [0], [1], [0, 0, 1, 1], [], []>} : vector<16x128xbf16>, vector<128x128xbf16>, vector<16x128xf32> -> vector<16x128xf32>
      %cst_27 = arith.constant dense<0.000000e+00> : vector<16x128xf32>
      %82 = tpu.matmul %6, %81, %cst_27 {dimension_numbers = #tpu.dot_dimension_numbers<[1], [0], [0], [1], [0, 0, 1, 1], [], []>} : vector<16x16xf32>, vector<16x128xf32>, vector<16x128xf32> -> vector<16x128xf32>
      %83 = vector.broadcast %77 : vector<1x128xf32> to vector<16x128xf32>
      %84 = arith.addf %82, %83 : vector<16x128xf32>
      %cst_28 = arith.constant dense<0.000000e+00> : vector<128xf32>
      %85 = vector.multi_reduction <add>, %84, %cst_28 [0] : vector<16x128xf32> to vector<128xf32>
      %86 = vector.shape_cast %85 : vector<128xf32> to vector<1x128xf32>
      %cst_29 = arith.constant 1.600000e+01 : f32
      %87 = vector.broadcast %cst_29 : f32 to vector<1x128xf32>
      %88 = arith.divf %86, %87 : vector<1x128xf32>
      %89 = vector.broadcast %88 : vector<1x128xf32> to vector<16x128xf32>
      %90 = arith.subf %84, %89 : vector<16x128xf32>
      %91 = arith.mulf %90, %90 : vector<16x128xf32>
      %cst_30 = arith.constant dense<0.000000e+00> : vector<128xf32>
      %92 = vector.multi_reduction <add>, %91, %cst_30 [0] : vector<16x128xf32> to vector<128xf32>
      %93 = vector.shape_cast %92 : vector<128xf32> to vector<1x128xf32>
      %cst_31 = arith.constant 1.600000e+01 : f32
      %94 = vector.broadcast %cst_31 : f32 to vector<1x128xf32>
      %95 = arith.divf %93, %94 : vector<1x128xf32>
      %96 = vector.broadcast %88 : vector<1x128xf32> to vector<16x128xf32>
      %97 = arith.subf %84, %96 : vector<16x128xf32>
      %cst_32 = arith.constant 9.99999974E-6 : f32
      %98 = vector.broadcast %cst_32 : f32 to vector<1x128xf32>
      %99 = arith.addf %95, %98 : vector<1x128xf32>
      %100 = math.rsqrt %99 : vector<1x128xf32>
      %101 = vector.broadcast %100 : vector<1x128xf32> to vector<16x128xf32>
      %102 = arith.mulf %97, %101 : vector<16x128xf32>
      %103 = vector.broadcast %78 : vector<1x128xf32> to vector<16x128xf32>
      %104 = arith.mulf %102, %103 : vector<16x128xf32>
      %105 = vector.broadcast %79 : vector<1x128xf32> to vector<16x128xf32>
      %106 = arith.addf %104, %105 : vector<16x128xf32>
      %cst_33 = arith.constant 0.000000e+00 : f32
      %107 = vector.broadcast %cst_33 : f32 to vector<16x128xf32>
      %108 = arith.maximumf %106, %107 : vector<16x128xf32>
      %c0_34 = arith.constant 0 : index
      %c0_35 = arith.constant 0 : index
      %109 = vector.load %arg6[%c0_34, %c0_35] : memref<2x16xf32, #tpu.memory_space<vmem>>, vector<2x16xf32>
      %cst_36 = arith.constant dense<0.000000e+00> : vector<2x128xf32>
      %110 = tpu.matmul %109, %108, %cst_36 {dimension_numbers = #tpu.dot_dimension_numbers<[1], [0], [0], [1], [0, 0, 1, 1], [], []>} : vector<2x16xf32>, vector<16x128xf32>, vector<2x128xf32> -> vector<2x128xf32>
      %111 = arith.truncf %110 : vector<2x128xf32> to vector<2x128xbf16>
      %c0_37 = arith.constant 0 : index
      %c0_38 = arith.constant 0 : index
      %112 = vector.load %arg7[%c0_37, %c0_38] : memref<128x128xbf16, #tpu.memory_space<vmem>>, vector<128x128xbf16>
      %cst_39 = arith.constant dense<0.000000e+00> : vector<2x128xf32>
      %113 = tpu.matmul %111, %112, %cst_39 {dimension_numbers = #tpu.dot_dimension_numbers<[1], [0], [0], [1], [0, 0, 1, 1], [], []>} : vector<2x128xbf16>, vector<128x128xbf16>, vector<2x128xf32> -> vector<2x128xf32>
      %114 = vector.extract_strided_slice %7 {offsets = [9, 0], sizes = [1, 128], strides = [1, 1]} : vector<11x128xf32> to vector<1x128xf32>
      %115 = vector.broadcast %114 : vector<1x128xf32> to vector<2x128xf32>
      %116 = arith.addf %113, %115 : vector<2x128xf32>
      %cst_40 = arith.constant 0.000000e+00 : f32
      %117 = vector.broadcast %cst_40 : f32 to vector<2x128xf32>
      %118 = arith.maximumf %116, %117 : vector<2x128xf32>
      %119 = arith.truncf %118 : vector<2x128xf32> to vector<2x128xbf16>
      %c0_41 = arith.constant 0 : index
      %c0_42 = arith.constant 0 : index
      %120 = vector.load %arg8[%c0_41, %c0_42] : memref<128x128xbf16, #tpu.memory_space<vmem>>, vector<128x128xbf16>
      %cst_43 = arith.constant dense<0.000000e+00> : vector<2x128xf32>
      %121 = tpu.matmul %119, %120, %cst_43 {dimension_numbers = #tpu.dot_dimension_numbers<[1], [0], [0], [1], [0, 0, 1, 1], [], []>} : vector<2x128xbf16>, vector<128x128xbf16>, vector<2x128xf32> -> vector<2x128xf32>
      %122 = vector.extract_strided_slice %7 {offsets = [10, 0], sizes = [1, 128], strides = [1, 1]} : vector<11x128xf32> to vector<1x128xf32>
      %123 = vector.broadcast %122 : vector<1x128xf32> to vector<2x128xf32>
      %124 = arith.addf %121, %123 : vector<2x128xf32>
      %c0_44 = arith.constant 0 : index
      %c0_45 = arith.constant 0 : index
      %c0_46 = arith.constant 0 : index
      %125 = vector.load %arg15[%c0_44, %c0_45, %c0_46] : memref<1x2x128xf32, #tpu.memory_space<vmem>>, vector<1x2x128xf32>
      %126 = vector.shape_cast %125 : vector<1x2x128xf32> to vector<2x128xf32>
      %127 = vector.shape_cast %124 : vector<2x128xf32> to vector<1x2x128xf32>
      tpu.vector_store %arg15[%c0_44, %c0_45, %c0_46], %127 {strides = array<i32>} : memref<1x2x128xf32, #tpu.memory_space<vmem>>, vector<1x2x128xf32>,
    } else {
    }
    %c1_i32 = arith.constant 1 : i32
    %3 = arith.cmpi eq, %arg0, %c1_i32 : i32
    %4 = arith.extui %3 : i1 to i32
    %c0_i32_1 = arith.constant 0 : i32
    %5 = arith.cmpi ne, %4, %c0_i32_1 : i32
    scf.if %5 {
      %c0 = arith.constant 0 : index
      %c0_2 = arith.constant 0 : index
      %6 = vector.load %arg14[%c0, %c0_2] : memref<12x128xf32, #tpu.memory_space<vmem>>, vector<12x128xf32>
      %c0_3 = arith.constant 0 : index
      %c0_4 = arith.constant 0 : index
      %7 = vector.load %arg9[%c0_3, %c0_4] : memref<16x128xf32, #tpu.memory_space<vmem>>, vector<16x128xf32>
      %8 = vector.extract_strided_slice %6 {offsets = [0, 0], sizes = [1, 128], strides = [1, 1]} : vector<12x128xf32> to vector<1x128xf32>
      %9 = vector.extract_strided_slice %6 {offsets = [1, 0], sizes = [1, 128], strides = [1, 1]} : vector<12x128xf32> to vector<1x128xf32>
      %cst = arith.constant dense<0.000000e+00> : vector<16xf32>
      %10 = vector.multi_reduction <add>, %7, %cst [1] : vector<16x128xf32> to vector<16xf32>
      %11 = vector.shape_cast %10 : vector<16xf32> to vector<16x1xf32>
      %cst_5 = arith.constant 1.280000e+02 : f32
      %12 = vector.broadcast %cst_5 : f32 to vector<16x1xf32>
      %13 = arith.divf %11, %12 : vector<16x1xf32>
      %14 = vector.broadcast %13 : vector<16x1xf32> to vector<16x128xf32>
      %15 = arith.subf %7, %14 : vector<16x128xf32>
      %16 = arith.mulf %15, %15 : vector<16x128xf32>
      %cst_6 = arith.constant dense<0.000000e+00> : vector<16xf32>
      %17 = vector.multi_reduction <add>, %16, %cst_6 [1] : vector<16x128xf32> to vector<16xf32>
      %18 = vector.shape_cast %17 : vector<16xf32> to vector<16x1xf32>
      %cst_7 = arith.constant 1.280000e+02 : f32
      %19 = vector.broadcast %cst_7 : f32 to vector<16x1xf32>
      %20 = arith.divf %18, %19 : vector<16x1xf32>
      %21 = vector.broadcast %13 : vector<16x1xf32> to vector<16x128xf32>
      %22 = arith.subf %7, %21 : vector<16x128xf32>
      %cst_8 = arith.constant 9.99999996E-13 : f32
      %23 = vector.broadcast %cst_8 : f32 to vector<16x1xf32>
      %24 = arith.addf %20, %23 : vector<16x1xf32>
      %25 = math.rsqrt %24 : vector<16x1xf32>
      %26 = vector.broadcast %25 : vector<16x1xf32> to vector<16x128xf32>
      %27 = arith.mulf %22, %26 : vector<16x128xf32>
      %28 = vector.broadcast %8 : vector<1x128xf32> to vector<16x128xf32>
      %29 = arith.mulf %27, %28 : vector<16x128xf32>
      %30 = vector.broadcast %9 : vector<1x128xf32> to vector<16x128xf32>
      %31 = arith.addf %29, %30 : vector<16x128xf32>
      %32 = arith.truncf %31 : vector<16x128xf32> to vector<16x128xbf16>
      %c0_9 = arith.constant 0 : index
      %c0_10 = arith.constant 0 : index
      %33 = vector.load %arg11[%c0_9, %c0_10] : memref<512x128xbf16, #tpu.memory_space<vmem>>, vector<512x128xbf16>
      %34 = vector.extract_strided_slice %33 {offsets = [0, 0], sizes = [128, 128], strides = [1, 1]} : vector<512x128xbf16> to vector<128x128xbf16>
      %cst_11 = arith.constant dense<0.000000e+00> : vector<16x128xf32>
      %35 = tpu.matmul %32, %34, %cst_11 {dimension_numbers = #tpu.dot_dimension_numbers<[1], [0], [0], [1], [0, 0, 1, 1], [], []>} : vector<16x128xbf16>, vector<128x128xbf16>, vector<16x128xf32> -> vector<16x128xf32>
      %36 = vector.extract_strided_slice %6 {offsets = [2, 0], sizes = [1, 128], strides = [1, 1]} : vector<12x128xf32> to vector<1x128xf32>
      %37 = vector.broadcast %36 : vector<1x128xf32> to vector<16x128xf32>
      %38 = arith.addf %35, %37 : vector<16x128xf32>
      %39 = vector.extract_strided_slice %33 {offsets = [128, 0], sizes = [128, 128], strides = [1, 1]} : vector<512x128xbf16> to vector<128x128xbf16>
      %cst_12 = arith.constant dense<0.000000e+00> : vector<16x128xf32>
      %40 = tpu.matmul %32, %39, %cst_12 {dimension_numbers = #tpu.dot_dimension_numbers<[1], [0], [0], [1], [0, 0, 1, 1], [], []>} : vector<16x128xbf16>, vector<128x128xbf16>, vector<16x128xf32> -> vector<16x128xf32>
      %41 = vector.extract_strided_slice %6 {offsets = [3, 0], sizes = [1, 128], strides = [1, 1]} : vector<12x128xf32> to vector<1x128xf32>
      %42 = vector.broadcast %41 : vector<1x128xf32> to vector<16x128xf32>
      %43 = arith.addf %40, %42 : vector<16x128xf32>
      %44 = vector.extract_strided_slice %33 {offsets = [256, 0], sizes = [128, 128], strides = [1, 1]} : vector<512x128xbf16> to vector<128x128xbf16>
      %cst_13 = arith.constant dense<0.000000e+00> : vector<16x128xf32>
      %45 = tpu.matmul %32, %44, %cst_13 {dimension_numbers = #tpu.dot_dimension_numbers<[1], [0], [0], [1], [0, 0, 1, 1], [], []>} : vector<16x128xbf16>, vector<128x128xbf16>, vector<16x128xf32> -> vector<16x128xf32>
      %46 = vector.extract_strided_slice %6 {offsets = [4, 0], sizes = [1, 128], strides = [1, 1]} : vector<12x128xf32> to vector<1x128xf32>
      %47 = vector.broadcast %46 : vector<1x128xf32> to vector<16x128xf32>
      %48 = arith.addf %45, %47 : vector<16x128xf32>
      %cst_14 = arith.constant dense<0.000000e+00> : vector<16x16xf32>
      %49 = tpu.matmul %38, %43, %cst_14 {dimension_numbers = #tpu.dot_dimension_numbers<[1], [1], [0], [0], [0, 0, 1, 0], [], []>} : vector<16x128xf32>, vector<16x128xf32>, vector<16x16xf32> -> vector<16x16xf32>
      %cst_15 = arith.constant 0.0883883461 : f32
      %50 = vector.broadcast %cst_15 : f32 to vector<16x16xf32>
      %51 = arith.mulf %49, %50 : vector<16x16xf32>
      %c0_16 = arith.constant 0 : index
      %c0_17 = arith.constant 0 : index
      %52 = vector.load %arg10[%c0_16, %c0_17] : memref<16x16xf32, #tpu.memory_space<vmem>>, vector<16x16xf32>
      %53 = arith.addf %51, %52 : vector<16x16xf32>
      %cst_18 = arith.constant dense<0xFF800000> : vector<16xf32>
      %54 = vector.multi_reduction <maximumf>, %53, %cst_18 [1] : vector<16x16xf32> to vector<16xf32>
      %55 = vector.shape_cast %54 : vector<16xf32> to vector<16x1xf32>
      %56 = vector.broadcast %55 : vector<16x1xf32> to vector<16x16xf32>
      %57 = arith.subf %53, %56 : vector<16x16xf32>
      %58 = math.exp %57 : vector<16x16xf32>
      %cst_19 = arith.constant dense<0.000000e+00> : vector<16xf32>
      %59 = vector.multi_reduction <add>, %58, %cst_19 [1] : vector<16x16xf32> to vector<16xf32>
      %60 = vector.shape_cast %59 : vector<16xf32> to vector<16x1xf32>
      %61 = vector.broadcast %60 : vector<16x1xf32> to vector<16x16xf32>
      %62 = arith.divf %58, %61 : vector<16x16xf32>
      %cst_20 = arith.constant dense<0.000000e+00> : vector<16x128xf32>
      %63 = tpu.matmul %62, %48, %cst_20 {dimension_numbers = #tpu.dot_dimension_numbers<[1], [0], [0], [1], [0, 0, 1, 1], [], []>} : vector<16x16xf32>, vector<16x128xf32>, vector<16x128xf32> -> vector<16x128xf32>
      %64 = arith.truncf %63 : vector<16x128xf32> to vector<16x128xbf16>
      %65 = vector.extract_strided_slice %33 {offsets = [384, 0], sizes = [128, 128], strides = [1, 1]} : vector<512x128xbf16> to vector<128x128xbf16>
      %cst_21 = arith.constant dense<0.000000e+00> : vector<16x128xf32>
      %66 = tpu.matmul %64, %65, %cst_21 {dimension_numbers = #tpu.dot_dimension_numbers<[1], [0], [0], [1], [0, 0, 1, 1], [], []>} : vector<16x128xbf16>, vector<128x128xbf16>, vector<16x128xf32> -> vector<16x128xf32>
      %67 = vector.extract_strided_slice %6 {offsets = [5, 0], sizes = [1, 128], strides = [1, 1]} : vector<12x128xf32> to vector<1x128xf32>
      %68 = vector.broadcast %67 : vector<1x128xf32> to vector<16x128xf32>
      %69 = arith.addf %66, %68 : vector<16x128xf32>
      %70 = arith.addf %31, %69 : vector<16x128xf32>
      %71 = vector.extract_strided_slice %6 {offsets = [6, 0], sizes = [1, 128], strides = [1, 1]} : vector<12x128xf32> to vector<1x128xf32>
      %72 = vector.extract_strided_slice %6 {offsets = [7, 0], sizes = [1, 128], strides = [1, 1]} : vector<12x128xf32> to vector<1x128xf32>
      %cst_22 = arith.constant dense<0.000000e+00> : vector<16xf32>
      %73 = vector.multi_reduction <add>, %70, %cst_22 [1] : vector<16x128xf32> to vector<16xf32>
      %74 = vector.shape_cast %73 : vector<16xf32> to vector<16x1xf32>
      %cst_23 = arith.constant 1.280000e+02 : f32
      %75 = vector.broadcast %cst_23 : f32 to vector<16x1xf32>
      %76 = arith.divf %74, %75 : vector<16x1xf32>
      %77 = vector.broadcast %76 : vector<16x1xf32> to vector<16x128xf32>
      %78 = arith.subf %70, %77 : vector<16x128xf32>
      %79 = arith.mulf %78, %78 : vector<16x128xf32>
      %cst_24 = arith.constant dense<0.000000e+00> : vector<16xf32>
      %80 = vector.multi_reduction <add>, %79, %cst_24 [1] : vector<16x128xf32> to vector<16xf32>
      %81 = vector.shape_cast %80 : vector<16xf32> to vector<16x1xf32>
      %cst_25 = arith.constant 1.280000e+02 : f32
      %82 = vector.broadcast %cst_25 : f32 to vector<16x1xf32>
      %83 = arith.divf %81, %82 : vector<16x1xf32>
      %84 = vector.broadcast %76 : vector<16x1xf32> to vector<16x128xf32>
      %85 = arith.subf %70, %84 : vector<16x128xf32>
      %cst_26 = arith.constant 9.99999996E-13 : f32
      %86 = vector.broadcast %cst_26 : f32 to vector<16x1xf32>
      %87 = arith.addf %83, %86 : vector<16x1xf32>
      %88 = math.rsqrt %87 : vector<16x1xf32>
      %89 = vector.broadcast %88 : vector<16x1xf32> to vector<16x128xf32>
      %90 = arith.mulf %85, %89 : vector<16x128xf32>
      %91 = vector.broadcast %71 : vector<1x128xf32> to vector<16x128xf32>
      %92 = arith.mulf %90, %91 : vector<16x128xf32>
      %93 = vector.broadcast %72 : vector<1x128xf32> to vector<16x128xf32>
      %94 = arith.addf %92, %93 : vector<16x128xf32>
      %95 = vector.shape_cast %94 : vector<16x128xf32> to vector<2x8x128xf32>
      %96 = vector.extract_strided_slice %95 {offsets = [0, 0, 0], sizes = [2, 1, 128], strides = [1, 1, 1]} : vector<2x8x128xf32> to vector<2x1x128xf32>
      %97 = vector.shape_cast %96 : vector<2x1x128xf32> to vector<2x128xf32>
      %98 = arith.truncf %97 : vector<2x128xf32> to vector<2x128xbf16>
      %c0_27 = arith.constant 0 : index
      %c0_28 = arith.constant 0 : index
      %99 = vector.load %arg12[%c0_27, %c0_28] : memref<128x128xbf16, #tpu.memory_space<vmem>>, vector<128x128xbf16>
      %cst_29 = arith.constant dense<0.000000e+00> : vector<2x128xf32>
      %100 = tpu.matmul %98, %99, %cst_29 {dimension_numbers = #tpu.dot_dimension_numbers<[1], [0], [0], [1], [0, 0, 1, 1], [], []>} : vector<2x128xbf16>, vector<128x128xbf16>, vector<2x128xf32> -> vector<2x128xf32>
      %101 = vector.extract_strided_slice %6 {offsets = [8, 0], sizes = [1, 128], strides = [1, 1]} : vector<12x128xf32> to vector<1x128xf32>
      %102 = vector.broadcast %101 : vector<1x128xf32> to vector<2x128xf32>
      %103 = arith.addf %100, %102 : vector<2x128xf32>
      %cst_30 = arith.constant 5.000000e-01 : f32
      %104 = vector.broadcast %cst_30 : f32 to vector<2x128xf32>
      %105 = arith.mulf %104, %103 : vector<2x128xf32>
      %cst_31 = arith.constant 4.471500e-02 : f32
      %106 = vector.broadcast %cst_31 : f32 to vector<2x128xf32>
      %107 = arith.mulf %106, %103 : vector<2x128xf32>
      %108 = arith.mulf %107, %103 : vector<2x128xf32>
      %109 = arith.mulf %108, %103 : vector<2x128xf32>
      %110 = arith.addf %103, %109 : vector<2x128xf32>
      %cst_32 = arith.constant 0.797884583 : f32
      %111 = vector.broadcast %cst_32 : f32 to vector<2x128xf32>
      %112 = arith.mulf %111, %110 : vector<2x128xf32>
      %113 = math.tanh %112 : vector<2x128xf32>
      %cst_33 = arith.constant 1.000000e+00 : f32
      %114 = vector.broadcast %cst_33 : f32 to vector<2x128xf32>
      %115 = arith.addf %114, %113 : vector<2x128xf32>
      %116 = arith.mulf %105, %115 : vector<2x128xf32>
      %117 = arith.truncf %116 : vector<2x128xf32> to vector<2x128xbf16>
      %c0_34 = arith.constant 0 : index
      %c0_35 = arith.constant 0 : index
      %118 = vector.load %arg13[%c0_34, %c0_35] : memref<128x128xbf16, #tpu.memory_space<vmem>>, vector<128x128xbf16>
      %cst_36 = arith.constant dense<0.000000e+00> : vector<2x128xf32>
      %119 = tpu.matmul %117, %118, %cst_36 {dimension_numbers = #tpu.dot_dimension_numbers<[1], [0], [0], [1], [0, 0, 1, 1], [], []>} : vector<2x128xbf16>, vector<128x128xbf16>, vector<2x128xf32> -> vector<2x128xf32>
      %120 = vector.extract_strided_slice %6 {offsets = [9, 0], sizes = [1, 128], strides = [1, 1]} : vector<12x128xf32> to vector<1x128xf32>
      %121 = vector.broadcast %120 : vector<1x128xf32> to vector<2x128xf32>
      %122 = arith.addf %119, %121 : vector<2x128xf32>
      %123 = arith.addf %97, %122 : vector<2x128xf32>
      %124 = vector.extract_strided_slice %6 {offsets = [10, 0], sizes = [1, 128], strides = [1, 1]} : vector<12x128xf32> to vector<1x128xf32>
      %125 = vector.extract_strided_slice %6 {offsets = [11, 0], sizes = [1, 128], strides = [1, 1]} : vector<12x128xf32> to vector<1x128xf32>
      %cst_37 = arith.constant dense<0.000000e+00> : vector<2xf32>
      %126 = vector.multi_reduction <add>, %123, %cst_37 [1] : vector<2x128xf32> to vector<2xf32>
      %127 = vector.shape_cast %126 : vector<2xf32> to vector<2x1xf32>
      %cst_38 = arith.constant 1.280000e+02 : f32
      %128 = vector.broadcast %cst_38 : f32 to vector<2x1xf32>
      %129 = arith.divf %127, %128 : vector<2x1xf32>
      %130 = vector.broadcast %129 : vector<2x1xf32> to vector<2x128xf32>
      %131 = arith.subf %123, %130 : vector<2x128xf32>
      %132 = arith.mulf %131, %131 : vector<2x128xf32>
      %cst_39 = arith.constant dense<0.000000e+00> : vector<2xf32>
      %133 = vector.multi_reduction <add>, %132, %cst_39 [1] : vector<2x128xf32> to vector<2xf32>
      %134 = vector.shape_cast %133 : vector<2xf32> to vector<2x1xf32>
      %cst_40 = arith.constant 1.280000e+02 : f32
      %135 = vector.broadcast %cst_40 : f32 to vector<2x1xf32>
      %136 = arith.divf %134, %135 : vector<2x1xf32>
      %137 = vector.broadcast %129 : vector<2x1xf32> to vector<2x128xf32>
      %138 = arith.subf %123, %137 : vector<2x128xf32>
      %cst_41 = arith.constant 9.99999996E-13 : f32
      %139 = vector.broadcast %cst_41 : f32 to vector<2x1xf32>
      %140 = arith.addf %136, %139 : vector<2x1xf32>
      %141 = math.rsqrt %140 : vector<2x1xf32>
      %142 = vector.broadcast %141 : vector<2x1xf32> to vector<2x128xf32>
      %143 = arith.mulf %138, %142 : vector<2x128xf32>
      %144 = vector.broadcast %124 : vector<1x128xf32> to vector<2x128xf32>
      %145 = arith.mulf %143, %144 : vector<2x128xf32>
      %146 = vector.broadcast %125 : vector<1x128xf32> to vector<2x128xf32>
      %147 = arith.addf %145, %146 : vector<2x128xf32>
      %c0_42 = arith.constant 0 : index
      %c0_43 = arith.constant 0 : index
      %c0_44 = arith.constant 0 : index
      %148 = vector.load %arg15[%c0_42, %c0_43, %c0_44] : memref<1x2x128xf32, #tpu.memory_space<vmem>>, vector<1x2x128xf32>
      %149 = vector.shape_cast %148 : vector<1x2x128xf32> to vector<2x128xf32>
      %150 = vector.shape_cast %147 : vector<2x128xf32> to vector<1x2x128xf32>
      tpu.vector_store %arg15[%c0_42, %c0_43, %c0_44], %150 {strides = array<i32>} : memref<1x2x128xf32, #tpu.memory_space<vmem>>, vector<1x2x128xf32>,
    } else {
    }
    return
  }
  func.func @transform_0(%arg0: i32) -> (i32, i32) {
    %c0_i32 = arith.constant 0 : i32
    %c0_i32_0 = arith.constant 0 : i32
    %c0_i32_1 = arith.constant 0 : i32
    return %c0_i32, %c0_i32_0 : i32, i32
  }
  func.func @transform_1(%arg0: i32) -> (i32, i32) {
    %c0_i32 = arith.constant 0 : i32
    %c0_i32_0 = arith.constant 0 : i32
    %c0_i32_1 = arith.constant 0 : i32
    return %c0_i32, %c0_i32_0 : i32, i32
  }
  func.func @transform_2(%arg0: i32) -> (i32, i32) {
    %c0_i32 = arith.constant 0 : i32
    %c0_i32_0 = arith.constant 0 : i32
    %c0_i32_1 = arith.constant 0 : i32
    return %c0_i32, %c0_i32_0 : i32, i32
  }
  func.func @transform_3(%arg0: i32) -> (i32, i32) {
    %c0_i32 = arith.constant 0 : i32
    %c0_i32_0 = arith.constant 0 : i32
    %c0_i32_1 = arith.constant 0 : i32
    return %c0_i32, %c0_i32_0 : i32, i32
  }
  func.func @transform_4(%arg0: i32) -> (i32, i32) {
    %c0_i32 = arith.constant 0 : i32
    %c0_i32_0 = arith.constant 0 : i32
    %c0_i32_1 = arith.constant 0 : i32
    return %c0_i32, %c0_i32_0 : i32, i32
  }
  func.func @transform_5(%arg0: i32) -> (i32, i32) {
    %c0_i32 = arith.constant 0 : i32
    %c0_i32_0 = arith.constant 0 : i32
    %c0_i32_1 = arith.constant 0 : i32
    return %c0_i32, %c0_i32_0 : i32, i32
  }
  func.func @transform_6(%arg0: i32) -> (i32, i32) {
    %c0_i32 = arith.constant 0 : i32
    %c0_i32_0 = arith.constant 0 : i32
    %c0_i32_1 = arith.constant 0 : i32
    return %c0_i32, %c0_i32_0 : i32, i32
  }
  func.func @transform_7(%arg0: i32) -> (i32, i32) {
    %c0_i32 = arith.constant 0 : i32
    %c0_i32_0 = arith.constant 0 : i32
    %c0_i32_1 = arith.constant 0 : i32
    return %c0_i32, %c0_i32_0 : i32, i32
  }
  func.func @transform_8(%arg0: i32) -> (i32, i32) {
    %c0_i32 = arith.constant 0 : i32
    %c0_i32_0 = arith.constant 0 : i32
    %c0_i32_1 = arith.constant 0 : i32
    return %c0_i32, %c0_i32_0 : i32, i32
  }
  func.func @transform_9(%arg0: i32) -> (i32, i32) {
    %c0_i32 = arith.constant 0 : i32
    %c0_i32_0 = arith.constant 0 : i32
    %c0_i32_1 = arith.constant 0 : i32
    return %c0_i32, %c0_i32_0 : i32, i32
  }
  func.func @transform_10(%arg0: i32) -> (i32, i32) {
    %c0_i32 = arith.constant 0 : i32
    %c0_i32_0 = arith.constant 0 : i32
    %c0_i32_1 = arith.constant 0 : i32
    return %c0_i32, %c0_i32_0 : i32, i32
  }
  func.func @transform_11(%arg0: i32) -> (i32, i32) {
    %c0_i32 = arith.constant 0 : i32
    %c0_i32_0 = arith.constant 0 : i32
    %c0_i32_1 = arith.constant 0 : i32
    return %c0_i32, %c0_i32_0 : i32, i32
  }
  func.func @transform_12(%arg0: i32) -> (i32, i32) {
    %c0_i32 = arith.constant 0 : i32
    %c0_i32_0 = arith.constant 0 : i32
    %c0_i32_1 = arith.constant 0 : i32
    return %c0_i32, %c0_i32_0 : i32, i32
  }
  func.func @transform_13(%arg0: i32) -> (i32, i32) {
    %c0_i32 = arith.constant 0 : i32
    %c0_i32_0 = arith.constant 0 : i32
    %c0_i32_1 = arith.constant 0 : i32
    return %c0_i32, %c0_i32_0 : i32, i32
  }
  func.func @transform_14(%arg0: i32) -> (i32, i32, i32) {
    %c0_i32 = arith.constant 0 : i32
    %c0_i32_0 = arith.constant 0 : i32
    %c0_i32_1 = arith.constant 0 : i32
    return %arg0, %c0_i32, %c0_i32_0 : i32, i32, i32
  }
}

</mosaic_0001>

<bundles_post_ra>
// kernel: mul.22
= control target key start
LH: loop header
LB: loop body
LE: loop exit
PB: predicated region body
PF: predicated region fallthrough
CT: control target
= control target key end

     0   :  { %vm7_vm0 = vcmask 64512   ;;  %vm13_vm1 = vcmask 130112   ;;  %s39_s0 = inlined_call_operand.vmem [shape: f32[2,8], index: 0, kind: input, shape index: {}]   ;;  %s40_s1 = inlined_call_operand.vmem [shape: f32[16], index: 1, kind: output, shape index: {}]  }
   0x1   :  { %v4_v0 = vld [vmem:[%s39_s0] sm:$0x3]  ;;  %s22_s0 = smov 8  }
   0x2   :  { %5 = vst [vmem:[#allocation1] sm:$0x3] %v4_v0 }
   0x9   :  { %v10_v1 = vld [vmem:[#allocation1 + $0x1] sm:$0x1]   ;;  %v6_v2 = vld [vmem:[#allocation1] sm:$0x1]  }
   0xa   :  { %11 = vrot.lane.b32.xlu0 %v10_v1, %s22_s0  ;;  %8 = vst.msk [vmem:[#allocation0] sm:$0x1] %vm7_vm0, %v6_v2  }
  0x7c   :  { %v12_v3 = vpop.permute.xlu0 %11  }
  0x7d   :  { %14 = vst.msk [vmem:[#allocation0] sm:$0x1] %vm13_vm1, %v12_v3  }
  0x84   :  { %v18_v4 = vld [vmem:[#allocation0] sm:$0x1] }
  0x85   :  { %20 = vst [vmem:[%s40_s1] sm:$0x1] %v18_v4 }

// kernel: model_forward.1
= control target key start
LH: loop header
LB: loop body
LE: loop exit
PB: predicated region body
PF: predicated region fallthrough
CT: control target
= control target key end

     0   :  { %s4103_s0 = inlined_call_operand.vmem [shape: f32[16,16], index: 0, kind: input, shape index: {}]   ;;  %s4104_s1 = inlined_call_operand.vmem [shape: f32[16,16], index: 1, kind: input, shape index: {}]   ;;  %s4105_s2 = inlined_call_operand.vmem [shape: bf16[16,128], index: 2, kind: input, shape index: {}]   ;;  %s4106_s3 = inlined_call_operand.hbm [shape: bf16[256,128], index: 3, kind: input, shape index: {}]   ;;  %s4107_s4 = inlined_call_operand.hbm [shape: f32[11,128], index: 4, kind: input, shape index: {}]   ;;  %s4108_s5 = inlined_call_operand.vmem [shape: f32[2,16], index: 5, kind: input, shape index: {}]   ;;  %s4109_s6 = inlined_call_operand.vmem [shape: bf16[128,128], index: 6, kind: input, shape index: {}]   ;;  %s4110_s7 = inlined_call_operand.hbm [shape: bf16[128,128], index: 7, kind: input, shape index: {}]   ;;  %s4111_s8 = inlined_call_operand.vmem [shape: f32[16,128], index: 8, kind: input, shape index: {}]   ;;  %s4112_s9 = inlined_call_operand.vmem [shape: f32[16,16], index: 9, kind: input, shape index: {}]   ;;  %s4113_s10 = inlined_call_operand.vmem [shape: bf16[512,128], index: 10, kind: input, shape index: {}]   ;;  %s4114_s11 = inlined_call_operand.hbm [shape: bf16[128,128], index: 11, kind: input, shape index: {}]   ;;  %s4115_s12 = inlined_call_operand.hbm [shape: bf16[128,128], index: 12, kind: input, shape index: {}]   ;;  %s4116_s13 = inlined_call_operand.hbm [shape: f32[12,128], index: 13, kind: input, shape index: {}]   ;;  %s4117_s14 = inlined_call_operand.vmem [shape: f32[2,2,128], index: 14, kind: output, shape index: {}]  }
   0x1   :  { %4125 = sst [smem:[#allocation17_spill]] %s4112_s9 }
   0x2   :  { %4126 = sst [smem:[#allocation18_spill]] %s4113_s10 }
   0x3   :  { %19 = vsyncpa [#allocation3], 0 }
   0x4   :  { %20 = vsyncpa [#allocation5], 0 }
   0x5   :  { %21 = vsyncpa [#allocation8], 0 }
   0x6   :  { %22 = vsyncpa [#allocation11], 0  ;;  %s3527_s29 = smov 0  }
   0x7 LB: > { %4127 = sst [smem:[#allocation16_spill]] %s3435_s29  ;;  %s3437_s30 = smov [#allocation4]   ;;  %s3435_s29 = sphi %s3527_s29, %s28_s29  }
   0x8   : > { %s387_s15 = sshll.u32 %s3437_s30, 4  ;;  %s3533_s16 = sadd.s32 4294967295, %s3435_s29   ;;  %s3539_s15 = int_to_ptr.vmem [resolvable:$true] %s387_s15 }
   0x9   : > { %p2564_p0 = scmp.ge.s32.totalorder %s3435_s29, 1  ;;  %p353_p1 = scmp.lt.s32.totalorder %s3435_s29, 3 }
   0xa   : > { %p4123_p3 = scmp.eq.s32.totalorder %s3533_s16, 0  ;;  %s3438_s19 = smov [#allocation7]  }
   0xb   : > { %p3541_p4 = pnand %p2564_p0, %p353_p1  ;;  %s428_s20 = sshll.u32 %s3438_s19, 4  ;;  %s3553_s20 = int_to_ptr.vmem [resolvable:$true] %s428_s20 }
   0xc   : > { %s3439_s21 = smov [#allocation2]   ;;  %s3245_s25 = scalar_lea.hbm %s4107_s4, 256 }
   0xd   : > { %s4128_s17 = scalar_select %p3541_p4, 1, 0 }
   0xe   : > { %p3084_p5 = pneg %p3541_p4  ;;  %s374_s22 = sshll.u32 %s3439_s21, 4  ;;  %s3555_s22 = int_to_ptr.vmem [resolvable:$true] %s374_s22 }
   0xf   : > { %p3246_p7 = scmp.ne.s32.totalorder %s4107_s4, %s3245_s25  ;;  %p3252_p11 = scmp.lt.u32.totalorder %s3245_s25, %s4107_s4 }
  0x10   : > { %p3549_p6 = pnand %p4123_p3, %p3084_p5 }
  0x12   : > { %p3565_p8 = pneg %p3549_p6 }
  0x14   : > { %p3248_p9 = pnand %p3565_p8, %p3246_p7 }
  0x16   : > { %p3249_p10 = pneg %p3248_p9 }
  0x18   : > { %p3254_p12 = pnand %p3252_p11, %p3249_p10 }
  0x1a   : > { %3257 = shalt.err (!%p3254_p12)
}
  0x1b   : > { %s3258_s21 = scalar_lea.vmem %s3539_s15, 256  ;;  %p3266_p5 = scmp.lt.s32.totalorder %s3539_s15, %s3539_s15 }
  0x1c   : > { %p3259_p13 = scmp.ne.s32.totalorder %s3539_s15, %s3258_s21  ;;  %p3267_p2 = scmp.lt.s32.totalorder %s3258_s21, %s3258_s21 }
  0x1e   : > { %p3261_p0 = pnand %p3259_p13, %p3565_p8  ;;  %p3268_p7 = por %p3267_p2, %p3266_p5 }
  0x20   : > { %p3262_p1 = pneg %p3261_p0 }
  0x22   : > { %p3269_p9 = pnand %p3268_p7, %p3262_p1 }
  0x24   : > { %3272 = shalt.err (!%p3269_p9)
}
  0x25   : > { %s4121_s23 = smov 128   ;;  %s4122_s24 = smov 8  }
  0x26   : > { %3090 = dma.hbm_to_vmem [thread:$0]  (!%p3549_p6), %s4107_s4, 256, %s3539_s15, [#allocation5], %s4121_s23, %s4121_s23, %s4122_s24  }
  0x27   : > { %s3273_s19 = scalar_lea.hbm %s4114_s11, 1024 }
  0x28   : > { %p3274_p2 = scmp.ne.s32.totalorder %s4114_s11, %s3273_s19  ;;  %p3280_p12 = scmp.lt.u32.totalorder %s3273_s19, %s4114_s11 }
  0x2a   : > { %p3276_p10 = pnand %p3274_p2, %p3565_p8 }
  0x2c   : > { %p3277_p11 = pneg %p3276_p10 }
  0x2e   : > { %p3282_p13 = pnand %p3280_p12, %p3277_p11 }
  0x30   : > { %3285 = shalt.err (!%p3282_p13)
}
  0x31   : > { %s3286_s15 = scalar_lea.vmem %s3553_s20, 1024  ;;  %p3294_p7 = scmp.lt.s32.totalorder %s3553_s20, %s3553_s20 }
  0x32   : > { %p3287_p0 = scmp.ne.s32.totalorder %s3553_s20, %s3286_s15  ;;  %p3295_p9 = scmp.lt.s32.totalorder %s3286_s15, %s3286_s15 }
  0x34   : > { %p3289_p1 = pnand %p3287_p0, %p3565_p8  ;;  %p3296_p2 = por %p3295_p9, %p3294_p7 }
  0x36   : > { %p3290_p5 = pneg %p3289_p1 }
  0x38   : > { %p3297_p10 = pnand %p3296_p2, %p3290_p5 }
  0x3a   : > { %3300 = shalt.err (!%p3297_p10)
}
  0x3b   : > { %s3442_s29 = smov 64   ;;  %s3443_s9 = smov 4  }
  0x3c   : > { %3096 = dma.hbm_to_vmem [thread:$0]  (!%p3549_p6), %s4114_s11, 1024, %s3553_s20, [#allocation8], %s3442_s29, %s3442_s29, %s3443_s9  }
  0x3d   : > { %s3301_s30 = scalar_lea.hbm %s4106_s3, 2048 }
  0x3e   : > { %p3302_p11 = scmp.ne.s32.totalorder %s4106_s3, %s3301_s30  ;;  %p3308_p0 = scmp.lt.u32.totalorder %s3301_s30, %s4106_s3 }
  0x40   : > { %p3304_p12 = pnand %p3302_p11, %p3565_p8 }
  0x42   : > { %p3305_p13 = pneg %p3304_p12 }
  0x44   : > { %p3310_p1 = pnand %p3308_p0, %p3305_p13 }
  0x46   : > { %3313 = shalt.err (!%p3310_p1)
}
  0x47   : > { %s3314_s20 = scalar_lea.vmem %s3555_s22, 2048  ;;  %p3322_p2 = scmp.lt.s32.totalorder %s3555_s22, %s3555_s22 }
  0x48   : > { %p3315_p5 = scmp.ne.s32.totalorder %s3555_s22, %s3314_s20  ;;  %p3323_p10 = scmp.lt.s32.totalorder %s3314_s20, %s3314_s20 }
  0x4a   : > { %p3317_p7 = pnand %p3315_p5, %p3565_p8  ;;  %p3324_p11 = por %p3323_p10, %p3322_p2 }
  0x4c   : > { %p3318_p9 = pneg %p3317_p7 }
  0x4e   : > { %p3325_p12 = pnand %p3324_p11, %p3318_p9 }
  0x50   : > { %3328 = shalt.err (!%p3325_p12)
}
  0x51   : > { %3087 = dma.hbm_to_vmem [thread:$0]  (!%p3549_p6), %s4106_s3, 2048, %s3555_s22, [#allocation3], %s3442_s29, %s3442_s29, %s3443_s9  }
  0x52   : > { %s3444_s25 = smov [#allocation6]   ;;  %s3445_s27 = smov [#allocation9]  }
  0x53   : > { %s406_s26 = sshll.u32 %s3444_s25, 4  ;;  %s441_s30 = sshll.u32 %s3445_s27, 4  ;;  %s407_s26 = int_to_ptr.vmem [resolvable:$true] %s406_s26  ;;  %s3641_s30 = int_to_ptr.vmem [resolvable:$true] %s441_s30 }
  0x54   : > { %s3329_s15 = scalar_lea.hbm %s4110_s7, 1024 }
  0x55   : > { %p3330_p13 = scmp.ne.s32.totalorder %s4110_s7, %s3329_s15  ;;  %p3336_p5 = scmp.lt.u32.totalorder %s3329_s15, %s4110_s7 }
  0x57   : > { %p3332_p0 = pnand %p3330_p13, %p3565_p8 }
  0x59   : > { %p3333_p1 = pneg %p3332_p0 }
  0x5b   : > { %p3338_p7 = pnand %p3336_p5, %p3333_p1 }
  0x5d   : > { %3341 = shalt.err (!%p3338_p7)
}
  0x5e   : > { %s3342_s10 = scalar_lea.vmem %s407_s26, 1024  ;;  %p3350_p11 = scmp.lt.s32.totalorder %s407_s26, %s407_s26 }
  0x5f   : > { %p3343_p9 = scmp.ne.s32.totalorder %s407_s26, %s3342_s10  ;;  %p3351_p12 = scmp.lt.s32.totalorder %s3342_s10, %s3342_s10 }
  0x61   : > { %p3345_p2 = pnand %p3343_p9, %p3565_p8  ;;  %p3352_p3 = por %p3351_p12, %p3350_p11 }
  0x63   : > { %p3346_p10 = pneg %p3345_p2 }
  0x65   : > { %p3353_p4 = pnand %p3352_p3, %p3346_p10 }
  0x67   : > { %3356 = shalt.err (!%p3353_p4)
}
  0x68   : > { %3093 = dma.hbm_to_vmem [thread:$0]  (!%p3549_p6), %s4110_s7, 1024, %s407_s26, [#allocation5], %s3442_s29, %s3442_s29, %s3443_s9  }
  0x69   : > { %s3357_s21 = scalar_lea.hbm %s4115_s12, 1024 }
  0x6a   : > { %p3358_p13 = scmp.ne.s32.totalorder %s4115_s12, %s3357_s21  ;;  %p3364_p0 = scmp.lt.u32.totalorder %s3357_s21, %s4115_s12 }
  0x6c   : > { %p3360_p3 = pnand %p3358_p13, %p3565_p8 }
  0x6e   : > { %p3361_p4 = pneg %p3360_p3 }
  0x70   : > { %p3366_p1 = pnand %p3364_p0, %p3361_p4 }
  0x72   : > { %3369 = shalt.err (!%p3366_p1)
}
  0x73   : > { %s3370_s26 = scalar_lea.vmem %s3641_s30, 1024  ;;  %p3378_p2 = scmp.lt.s32.totalorder %s3641_s30, %s3641_s30 }
  0x74   : > { %p3371_p5 = scmp.ne.s32.totalorder %s3641_s30, %s3370_s26  ;;  %p3379_p10 = scmp.lt.s32.totalorder %s3370_s26, %s3370_s26 }
  0x76   : > { %p3373_p7 = pnand %p3371_p5, %p3565_p8  ;;  %p3380_p11 = por %p3379_p10, %p3378_p2 }
  0x78   : > { %p3374_p9 = pneg %p3373_p7 }
  0x7a   : > { %p3381_p12 = pnand %p3380_p11, %p3374_p9 }
  0x7c   : > { %3384 = shalt.err (!%p3381_p12)
}
  0x7d   : > { %3099 = dma.hbm_to_vmem [thread:$0]  (!%p3549_p6), %s4115_s12, 1024, %s3641_s30, [#allocation8], %s3442_s29, %s3442_s29, %s3443_s9  }
  0x7e   : > { %s3446_s25 = smov [#allocation10]   ;;  %s3385_s15 = scalar_lea.hbm %s4116_s13, 256 }
  0x7f   : > { %s454_s27 = sshll.u32 %s3446_s25, 4  ;;  %p3386_p13 = scmp.ne.s32.totalorder %s4116_s13, %s3385_s15  ;;  %s455_s27 = int_to_ptr.vmem [resolvable:$true] %s454_s27 }
  0x80   : > { %p3392_p0 = scmp.lt.u32.totalorder %s3385_s15, %s4116_s13 }
  0x81   : > { %p3388_p3 = pnand %p3386_p13, %p3565_p8 }
  0x83   : > { %p3389_p4 = pneg %p3388_p3 }
  0x85   : > { %p3394_p1 = pnand %p3392_p0, %p3389_p4 }
  0x87   : > { %3397 = shalt.err (!%p3394_p1)
}
  0x88   : > { %s3398_s29 = scalar_lea.vmem %s455_s27, 256  ;;  %p3406_p2 = scmp.lt.s32.totalorder %s455_s27, %s455_s27 }
  0x89   : > { %p3399_p5 = scmp.ne.s32.totalorder %s455_s27, %s3398_s29  ;;  %p3407_p10 = scmp.lt.s32.totalorder %s3398_s29, %s3398_s29 }
  0x8b   : > { %p3401_p7 = pnand %p3399_p5, %p3565_p8  ;;  %p3408_p11 = por %p3407_p10, %p3406_p2 }
  0x8d   : > { %p3402_p9 = pneg %p3401_p7 }
  0x8f   : > { %p3409_p12 = pnand %p3408_p11, %p3402_p9 }
  0x91   : > { %3412 = shalt.err (!%p3409_p12)
}
  0x92   : > { %s4131_s9 = smov 8   ;;  %s4132_s30 = smov 128  }
  0x93   : > { %3102 = dma.hbm_to_vmem [thread:$0]  (!%p3549_p6), %s4116_s13, 256, %s455_s27, [#allocation11], %s4132_s30, %s4132_s30, %s4131_s9  }
  0x94   : > { %p4133_p13 = scmp.ne.s32.totalorder %s4128_s17, 0 }
  0x95   : > { %p4134_p8 = scmp.eq.s32.totalorder (!%p4133_p13), %s3533_s16, 0 }
  0x96   : > { %470 = sbr.rel (%p4133_p13) target bundleno = 4923 (0x133b), region = 76 }
  0x9d   : > { %3418 = dma.done.wait (%p4134_p8), [#allocation3], 2048   ;;  %p4135_p3 = pmov %p4134_p8 }
  0x9f   : > { %3420 = vsyncadd (%p4135_p3), [#allocation3], 4294965248  ;;  %p4136_p4 = pmov %p4135_p3 }
  0xa0   : > { %p4137_p0 = pmov %p4135_p3 }
  0xa1   : > { %3422 = dma.done.wait (%p4136_p4), [#allocation5], 1280  }
  0xa2   : > { %3424 = vsyncadd (%p4137_p0), [#allocation5], 4294966016  ;;  %p4138_p1 = pmov %p4137_p0 }
  0xa3   : > { %p4139_p6 = pmov %p4137_p0 }
  0xa4   : > { %3426 = dma.done.wait (%p4138_p1), [#allocation8], 2048  }
  0xa5   : > { %3428 = vsyncadd (%p4139_p6), [#allocation8], 4294965248  ;;  %p4140_p5 = pmov %p4137_p0 }
  0xa6   : > { %p4141_p7 = pmov %p4137_p0 }
  0xa7   : > { %3430 = dma.done.wait (%p4140_p5), [#allocation11], 256  }
  0xa8   : > { %3432 = vsyncadd (%p4141_p7), [#allocation11], 4294967040  ;;  %p530_p9 = scmp.lt.s32.totalorder %s3533_s16, 1  ;;  %p4142_p2 = scmp.ne.s32.totalorder %s3533_s16, 0 }
  0xa9   : > { %v3138_v0 = vld [vmem:[%s4105_s2] sm:$0xff] (!%p4142_p2)   ;;  %v3447_v1 = vmov (!%p4142_p2), 0.0   ;;  %v576_v3 = vld [vmem:[%s4104_s1 + $0x8] sm:$0xff] (!%p4142_p2)  ;;  %vm586_vm0 = vcmask (!%p4142_p2), 130048   ;;  %vm3448_vm1 = vmmov (!%p4142_p2), 0   ;;  %v3141_v14 = vld [vmem:[#allocation2 + $0x10] sm:$0xff] (!%p4142_p2)   ;;  %v631_v20 = vlaneseq (!%p4142_p2) }
  0xaa   : > { %s531_s17 = scalar_select %p530_p9, %s3533_s16, 1 }
  0xab   : > { %538 = sbr.rel (%p4142_p2) target bundleno = 2307 (0x903), region = 104  ;;  %2789 = vmatprep.subr.bf16.mxu0 (!%p4142_p2), %v3447_v1  ;;  %v575_v2 = vld [vmem:[%s4104_s1] sm:$0xff] (!%p4142_p2)  ;;  %2791 = vmatprep.mubr.msk.bf16.mxu0 (!%p4142_p2), %vm3448_vm1, %v3447_v1  ;;  %v3764_v11 = vld [vmem:[%s4103_s0 + $0x8] sm:$0xff] (!%p4142_p2)  ;;  %v3142_v15 = vld [vmem:[#allocation2 + $0x18] sm:$0xff] (!%p4142_p2)   ;;  %v3777_v21 = vshrl.u32 (!%p4142_p2), %v631_v20, 7 }
  0xac   : > { %s2578_s18 = sshll.u32 %s531_s17, 1  ;;  %2790 = vmatpush3.bf16.msra.mxu0 (!%p4142_p2), %v3138_v0  ;;  %v579_v4 = vpack.c.bf16 (!%p4142_p2), %v576_v3, %v575_v2  ;;  %v3757_v5 = vld [vmem:[%s4103_s0] sm:$0xff] (!%p4142_p2)  ;;  %v3140_v13 = vld [vmem:[#allocation2 + $0x8] sm:$0xff] (!%p4142_p2)   ;;  %v3145_v18 = vld [vmem:[#allocation2 + $0x30] sm:$0xff] (!%p4142_p2)  }
  0xad   : > { %s3734_s27 = scalar_lea.vmem %s4117_s14, %s2578_s18  ;;  %2802 = vmatprep.subr.bf16.mxu0 (!%p4142_p2), %v3447_v1  ;;  %2799 = vmatprep.mubr.msk.f32.mxu1 (!%p4142_p2), %vm586_vm0, %v3757_v5  ;;  %v3139_v12 = vld [vmem:[#allocation2] sm:$0xff] (!%p4142_p2)   ;;  %v3144_v17 = vld [vmem:[#allocation2 + $0x28] sm:$0xff] (!%p4142_p2)   ;;  %v3146_v19 = vld [vmem:[#allocation2 + $0x38] sm:$0xff] (!%p4142_p2)   ;;  %v633_v22 = vsub.s32 (!%p4142_p2), 0, %v3777_v21  ;;  %v743_v50 = vsub.s32 (!%p4142_p2), 1, %v3777_v21  ;;  %v749_v51 = vsub.s32 (!%p4142_p2), 2, %v3777_v21 }
  0xae   : > { %v3143_v16 = vld [vmem:[#allocation2 + $0x20] sm:$0xff] (!%p4142_p2)  }
  0xaf   : > { %2792 = vmatmul.mubr.msk.bf16.vlgmr.msra.gmra.mrb[0].mxu0 (!%p4142_p2), %vm586_vm0, %v579_v4  ;;  %v3780_v23 = vld [vmem:[#allocation4] sm:$0xff] (!%p4142_p2) }
  0xb0   : > { %2818 = vmatprep.mubr.msk.bf16.mxu0 (!%p4142_p2), %vm3448_vm1, %v3447_v1  ;;  %2803 = vmatpush3.bf16.msra.mxu0 (!%p4142_p2), %v3139_v12  ;;  %v634_v24 = vrot.slane (!%p4142_p2), %v3780_v23, %v633_v22  ;;  %v744_v52 = vrot.slane (!%p4142_p2), %v3780_v23, %v743_v50  ;;  %v750_v56 = vrot.slane (!%p4142_p2), %v3780_v23, %v749_v51  ;;  %v3152_v12 = vld [vmem:[#allocation2 + $0x68] sm:$0xff] (!%p4142_p2)  }
  0xb1   : > { %2804 = vmatprep.subr.bf16.mxu0 (!%p4142_p2), %v3447_v1 }
  0xb4   : > { %2805 = vmatpush3.bf16.msra.mxu0 %v3140_v13  ;;  %v3153_v13 = vld [vmem:[#allocation2 + $0x70] sm:$0xff]  }
  0xb5   : > { %2806 = vmatprep.subr.bf16.mxu0 %v3447_v1 }
  0xb8   : > { %2807 = vmatpush3.bf16.msra.mxu0 %v3141_v14  ;;  %v3154_v14 = vld [vmem:[#allocation2 + $0x78] sm:$0xff]  }
  0xb9   : > { %2808 = vmatprep.subr.bf16.mxu0 %v3447_v1 }
  0xbc   : > { %2809 = vmatpush3.bf16.msra.mxu0 %v3142_v15  ;;  %v847_v15 = vsub.s32 3, %v3777_v21 }
  0xbd   : > { %2810 = vmatprep.subr.bf16.mxu0 %v3447_v1 }
  0xc0   : > { %2811 = vmatpush3.bf16.msra.mxu0 %v3143_v16  ;;  %v848_v16 = vrot.slane %v3780_v23, %v847_v15 }
  0xc1   : > { %2812 = vmatprep.subr.bf16.mxu0 %v3447_v1 }
  0xc4   : > { %2813 = vmatpush3.bf16.msra.mxu0 %v3144_v17 }
  0xc5   : > { %2814 = vmatprep.subr.bf16.mxu0 %v3447_v1 }
  0xc8   : > { %2815 = vmatpush3.bf16.msra.mxu0 %v3145_v18 }
  0xc9   : > { %2816 = vmatprep.subr.bf16.mxu0 %v3447_v1 }
  0xcc   : > { %2817 = vmatpush3.bf16.msra.mxu0 %v3146_v19 }
 0x182   : > { %v624_v6 = vpop.f32.mrb[0].mxu0 }
 0x183   : > { %v2793_v7 = vpop.f32.mrb[1].mxu0 }
 0x184   : > { %v627_v8 = vpop.f32.mrb[2].mxu0  ;;  %v3147_v7 = vld [vmem:[#allocation2 + $0x40] sm:$0xff]  }
 0x185   : > { %v3037_v9 = vpack.c.bf16 %v627_v8, %v624_v6  ;;  %v2794_v10 = vpop.f32.mrb[3].mxu0  ;;  %v3149_v8 = vld [vmem:[#allocation2 + $0x50] sm:$0xff]  }
 0x186   : > { %v3151_v10 = vld [vmem:[#allocation2 + $0x60] sm:$0xff]  }
 0x187   : > { %3038 = vmatprep.subr.bf16.mxu1 %v3037_v9 }
 0x188   : > { %3040 = vmatpush3.bf16.msra.mxu1 %v3037_v9  ;;  %v3150_v9 = vld [vmem:[#allocation2 + $0x58] sm:$0xff]  }
 0x18b   : > { %2800 = vmatmul.mubr.msk.f32.vlgmr.msra.gmra.mrb[0].mxu1 %vm586_vm0, %v3764_v11 }
 0x18c   : > { %2826 = vmatprep.mubr.msk.f32.mxu1 %vm586_vm0, %v3757_v5 }
 0x25e   : > { %v2801_v25 = vpop.f32.mrb[0].mxu1 }
 0x25f   : > { %v713_v26 = vadd.f32 %v2801_v25, %v634_v24  ;;  %v707_v27 = vpop.f32.mrb[1].mxu1 }
 0x260   : > { %v708_v28 = vadd.f32 %v707_v27, %v634_v24 }
 0x262   : > { %v716_v29 = vadd.f32 %v713_v26, %v708_v28 }
 0x264   : > { %v717_v30 = vrot.slane %v716_v29, 4 }
 0x266   : > { %v718_v31 = vadd.f32 %v717_v30, %v716_v29 }
 0x268   : > { %v719_v32 = vrot.slane %v718_v31, 2 }
 0x26a   : > { %v720_v33 = vadd.f32 %v719_v32, %v718_v31 }
 0x26c   : > { %v721_v34 = vrot.slane %v720_v33, 1 }
 0x26e   : > { %v722_v35 = vadd.f32 %v721_v34, %v720_v33 }
 0x270   : > { %v724_v36 = vmul.f32 0.0625, %v722_v35 }
 0x272   : > { %v725_v37 = vsub.f32 %v708_v28, %v724_v36  ;;  %v726_v38 = vsub.f32 %v713_v26, %v724_v36 }
 0x274   : > { %v727_v39 = vmul.f32 %v725_v37, %v725_v37  ;;  %v728_v40 = vmul.f32 %v726_v38, %v726_v38 }
 0x276   : > { %v729_v41 = vadd.f32 %v728_v40, %v727_v39 }
 0x278   : > { %v730_v42 = vrot.slane %v729_v41, 4 }
 0x27a   : > { %v731_v43 = vadd.f32 %v730_v42, %v729_v41 }
 0x27c   : > { %v732_v44 = vrot.slane %v731_v43, 2 }
 0x27e   : > { %v733_v45 = vadd.f32 %v732_v44, %v731_v43 }
 0x280   : > { %v734_v46 = vrot.slane %v733_v45, 1 }
 0x282   : > { %v735_v47 = vadd.f32 %v734_v46, %v733_v45  ;;  %v950_v45 = vsub.s32 4, %v3777_v21  ;;  %v956_v46 = vsub.s32 5, %v3777_v21 }
 0x284   : > { %v736_v48 = vmul.f32 0.0625, %v735_v47  ;;  %v951_v47 = vrot.slane %v3780_v23, %v950_v45 }
 0x286   : > { %v737_v49 = vadd.f32 1e-05, %v736_v48 }
 0x288   : > { %3171 = vrsqrt.f32 %v737_v49 }
 0x292   : > { %v3172_v53 = vpop.eup %3171 }
 0x293   : > { %v739_v54 = vmul.f32 %v3172_v53, %v725_v37  ;;  %v740_v55 = vmul.f32 %v3172_v53, %v726_v38  ;;  %v957_v53 = vrot.slane %v3780_v23, %v956_v46 }
 0x295   : > { %v745_v57 = vmul.f32 %v744_v52, %v739_v54  ;;  %v746_v58 = vmul.f32 %v744_v52, %v740_v55 }
 0x297   : > { %v751_v59 = vadd.f32 %v750_v56, %v745_v57  ;;  %v752_v60 = vadd.f32 %v750_v56, %v746_v58 }
 0x299   : > { %v753_v61 = vmax.f32 %v751_v59, 0.0  ;;  %v754_v62 = vmax.f32 %v752_v60, 0.0 }
 0x29b   : > { %v755_v63 = vpack.c.bf16 %v754_v62, %v753_v61 }
 0x29d   : > { %2819 = vmatmul.mubr.bf16.vlgmr.msra.gmra.mrb[4].mxu0 %v755_v63 }
 0x29e   : > { %2853 = vmatprep.mubr.msk.f32.mxu0 %vm586_vm0, %v3757_v5  ;;  %v3148_v5 = vld [vmem:[#allocation2 + $0x48] sm:$0xff]  }
 0x370   : > { %v838_v0 = vpop.f32.mrb[4].mxu0 }
 0x371   : > { %v2820_v2 = vpop.f32.mrb[5].mxu0 }
 0x372   : > { %v841_v3 = vpop.f32.mrb[6].mxu0 }
 0x373   : > { %v3041_v4 = vpack.c.bf16 %v841_v3, %v838_v0  ;;  %v2821_v6 = vpop.f32.mrb[7].mxu0  ;;  %v3449_v3 = vmov 0.0|0.0  }
 0x374   : > { %v3156_v6 = vld [vmem:[%s4109_s6 + $0x8] sm:$0xff]  }
 0x375   : > { %3042 = vmatprep.subr.bf16.mxu1 %v3041_v4 }
 0x376   : > { %3044 = vmatpush3.bf16.msra.mxu1 %v3041_v4  ;;  %v3155_v4 = vld [vmem:[%s4109_s6] sm:$0xff]  }
 0x377   : > { %2829 = vmatprep.subr.bf16.mxu1 %v3447_v1 }
 0x379   : > { %2827 = vmatmul.mubr.msk.f32.vlgmr.msra.gmra.mrb[2].mxu1 %vm586_vm0, %v3764_v11 }
 0x37a   : > { %2845 = vmatprep.mubr.msk.bf16.mxu1 %vm3448_vm1, %v3447_v1  ;;  %2830 = vmatpush3.bf16.msra.mxu1 %v3147_v7  ;;  %v3158_v7 = vld [vmem:[%s4109_s6 + $0x18] sm:$0xff]  }
 0x37b   : > { %2831 = vmatprep.subr.bf16.mxu1 %v3447_v1 }
 0x37e   : > { %2832 = vmatpush3.bf16.msra.mxu1 %v3148_v5  ;;  %v3159_v5 = vld [vmem:[%s4109_s6 + $0x20] sm:$0xff]  }
 0x37f   : > { %2833 = vmatprep.subr.bf16.mxu1 %v3447_v1 }
 0x382   : > { %2834 = vmatpush3.bf16.msra.mxu1 %v3149_v8  ;;  %v3160_v8 = vld [vmem:[%s4109_s6 + $0x28] sm:$0xff]  }
 0x383   : > { %2835 = vmatprep.subr.bf16.mxu1 %v3447_v1 }
 0x386   : > { %2836 = vmatpush3.bf16.msra.mxu1 %v3150_v9  ;;  %v3161_v9 = vld [vmem:[%s4109_s6 + $0x30] sm:$0xff]  }
 0x387   : > { %2837 = vmatprep.subr.bf16.mxu1 %v3447_v1 }
 0x38a   : > { %2838 = vmatpush3.bf16.msra.mxu1 %v3151_v10  ;;  %v1054_v10 = vsub.s32 6, %v3777_v21 }
 0x38b   : > { %2839 = vmatprep.subr.bf16.mxu1 %v3447_v1 }
 0x38e   : > { %2840 = vmatpush3.bf16.msra.mxu1 %v3152_v12  ;;  %v1055_v12 = vrot.slane %v3780_v23, %v1054_v10 }
 0x38f   : > { %2841 = vmatprep.subr.bf16.mxu1 %v3447_v1 }
 0x392   : > { %2842 = vmatpush3.bf16.msra.mxu1 %v3153_v13 }
 0x393   : > { %2843 = vmatprep.subr.bf16.mxu1 %v3447_v1 }
 0x396   : > { %2844 = vmatpush3.bf16.msra.mxu1 %v3154_v14 }
 0x397   : > { %2863 = vmatprep.subr.bf16.mxu1 %v3447_v1 }
 0x44c   : > { %v2828_v17 = vpop.f32.mrb[2].mxu1 }
 0x44d   : > { %v921_v18 = vadd.f32 %v2828_v17, %v848_v16  ;;  %v915_v19 = vpop.f32.mrb[3].mxu1 }
 0x44e   : > { %v916_v20 = vadd.f32 %v915_v19, %v848_v16 }
 0x450   : > { %v924_v24 = vadd.f32 %v921_v18, %v916_v20 }
 0x452   : > { %v925_v25 = vrot.slane %v924_v24, 4 }
 0x454   : > { %v926_v26 = vadd.f32 %v925_v25, %v924_v24 }
 0x456   : > { %v927_v27 = vrot.slane %v926_v26, 2 }
 0x458   : > { %v928_v28 = vadd.f32 %v927_v27, %v926_v26 }
 0x45a   : > { %v929_v29 = vrot.slane %v928_v28, 1 }
 0x45c   : > { %v930_v30 = vadd.f32 %v929_v29, %v928_v28 }
 0x45e   : > { %v931_v31 = vmul.f32 0.0625, %v930_v30 }
 0x460   : > { %v932_v32 = vsub.f32 %v916_v20, %v931_v31  ;;  %v933_v33 = vsub.f32 %v921_v18, %v931_v31 }
 0x462   : > { %v934_v34 = vmul.f32 %v932_v32, %v932_v32  ;;  %v935_v35 = vmul.f32 %v933_v33, %v933_v33 }
 0x464   : > { %v936_v36 = vadd.f32 %v935_v35, %v934_v34 }
 0x466   : > { %v937_v37 = vrot.slane %v936_v36, 4 }
 0x468   : > { %v938_v38 = vadd.f32 %v937_v37, %v936_v36 }
 0x46a   : > { %v939_v39 = vrot.slane %v938_v38, 2 }
 0x46c   : > { %v940_v40 = vadd.f32 %v939_v39, %v938_v38 }
 0x46e   : > { %v941_v41 = vrot.slane %v940_v40, 1 }
 0x470   : > { %v942_v42 = vadd.f32 %v941_v41, %v940_v40  ;;  %v1157_v41 = vsub.s32 7, %v3777_v21 }
 0x472   : > { %v943_v43 = vmul.f32 0.0625, %v942_v42  ;;  %v542_v42 = vld [vmem:[#allocation4 + $0x8] sm:$0x7] }
 0x473   : > { %v1164_v45 = vrot.slane %v542_v42, %v633_v22  ;;  %v3162_v22 = vld [vmem:[%s4109_s6 + $0x38] sm:$0xff]  }
 0x474   : > { %v944_v44 = vadd.f32 1e-05, %v943_v43  ;;  %v1158_v43 = vrot.slane %v3780_v23, %v1157_v41  ;;  %v3163_v23 = vld [vmem:[#allocation6] sm:$0xff]  }
 0x476   : > { %3173 = vrsqrt.f32 %v944_v44 }
 0x480   : > { %v3174_v48 = vpop.eup %3173 }
 0x481   : > { %v946_v49 = vmul.f32 %v3174_v48, %v932_v32  ;;  %v947_v52 = vmul.f32 %v3174_v48, %v933_v33 }
 0x483   : > { %v952_v54 = vmul.f32 %v951_v47, %v946_v49  ;;  %v953_v55 = vmul.f32 %v951_v47, %v947_v52 }
 0x485   : > { %v958_v56 = vadd.f32 %v957_v53, %v952_v54  ;;  %v959_v57 = vadd.f32 %v957_v53, %v953_v55 }
 0x487   : > { %v960_v58 = vmax.f32 %v958_v56, 0.0  ;;  %v961_v59 = vmax.f32 %v959_v57, 0.0  ;;  %v1169_v57 = vld [vmem:[%s4108_s5] sm:$0x3] }
 0x489   : > { %v962_v60 = vpack.c.bf16 %v961_v59, %v960_v58  ;;  %v3164_v58 = vld [vmem:[#allocation6 + $0x8] sm:$0xff]   ;;  %v3165_v59 = vld [vmem:[#allocation6 + $0x10] sm:$0xff]  }
 0x48b   : > { %2846 = vmatmul.mubr.bf16.vlgmr.msra.gmra.mrb[4].mxu1 %v962_v60  ;;  %v3166_v60 = vld [vmem:[#allocation6 + $0x18] sm:$0xff]  }
 0x48c   : > { %2879 = vmatprep.mubr.msk.bf16.mxu1 %vm3448_vm1, %v3447_v1  ;;  %2864 = vmatpush3.bf16.msra.mxu1 %v3155_v4  ;;  %v3170_v4 = vld [vmem:[#allocation6 + $0x38] sm:$0xff]  }
 0x48d   : > { %2865 = vmatprep.subr.bf16.mxu1 %v3447_v1 }
 0x490   : > { %2866 = vmatpush3.bf16.msra.mxu1 %v3156_v6  ;;  %v1263_v6 = vrot.slane %v542_v42, %v743_v50 }
 0x491   : > { %2867 = vmatprep.subr.bf16.mxu1 %v3447_v1 }
 0x55e   : > { %v1045_v61 = vpop.f32.mrb[4].mxu1 }
 0x55f   : > { %v2847_v62 = vpop.f32.mrb[5].mxu1 }
 0x560   : > { %v1048_v63 = vpop.f32.mrb[6].mxu1  ;;  %v3168_v62 = vld [vmem:[#allocation6 + $0x28] sm:$0xff]  }
 0x561   : > { %v3045_v0 = vpack.c.bf16 %v1048_v63, %v1045_v61  ;;  %v2848_v2 = vpop.f32.mrb[7].mxu1  ;;  %v3167_v61 = vld [vmem:[#allocation6 + $0x20] sm:$0xff]  }
 0x563   : > { %3046 = vmatprep.subr.bf16.mxu0 %v3045_v0 }
 0x564   : > { %3048 = vmatpush3.bf16.msra.mxu0 %v3045_v0 }
 0x565   : > { %3049 = vmatprep.subr.bf16.mxu0 %v3449_v3  ;;  %v3169_v3 = vld [vmem:[#allocation6 + $0x30] sm:$0xff]  }
 0x567   : > { %2854 = vmatmul.mubr.msk.f32.vlgmr.msra.gmra.mrb[8].mxu0 %vm586_vm0, %v3764_v11  ;;  %v3157_v11 = vld [vmem:[%s4109_s6 + $0x10] sm:$0xff]  }
 0x568   : > { %2860 = vmatprep.mubr.msk.f32.mxu0 %vm3448_vm1, %v3447_v1  ;;  %2868 = vmatpush3.bf16.msra.mxu1 %v3157_v11 }
 0x569   : > { %2869 = vmatprep.subr.bf16.mxu1 %v3447_v1 }
 0x56c   : > { %2870 = vmatpush3.bf16.msra.mxu1 %v3158_v7 }
 0x56d   : > { %2871 = vmatprep.subr.bf16.mxu1 %v3447_v1 }
 0x570   : > { %2872 = vmatpush3.bf16.msra.mxu1 %v3159_v5 }
 0x571   : > { %2873 = vmatprep.subr.bf16.mxu1 %v3447_v1 }
 0x574   : > { %2874 = vmatpush3.bf16.msra.mxu1 %v3160_v8 }
 0x575   : > { %2875 = vmatprep.subr.bf16.mxu1 %v3447_v1 }
 0x578   : > { %2876 = vmatpush3.bf16.msra.mxu1 %v3161_v9 }
 0x579   : > { %2877 = vmatprep.subr.bf16.mxu1 %v3447_v1 }
 0x57c   : > { %2878 = vmatpush3.bf16.msra.mxu1 %v3162_v22 }
 0x63a   : > { %v2855_v13 = vpop.f32.mrb[8].mxu0 }
 0x63b   : > { %v1128_v14 = vadd.f32 %v2855_v13, %v1055_v12  ;;  %v1122_v15 = vpop.f32.mrb[9].mxu0  ;;  %v1373_v13 = vrot.slane %v542_v42, %v749_v51 }
 0x63c   : > { %v1123_v16 = vadd.f32 %v1122_v15, %v1055_v12 }
 0x63e   : > { %v1131_v17 = vadd.f32 %v1128_v14, %v1123_v16 }
 0x640   : > { %v1132_v18 = vrot.slane %v1131_v17, 4 }
 0x642   : > { %v1133_v19 = vadd.f32 %v1132_v18, %v1131_v17 }
 0x644   : > { %v1134_v20 = vrot.slane %v1133_v19, 2 }
 0x646   : > { %v1135_v24 = vadd.f32 %v1134_v20, %v1133_v19 }
 0x648   : > { %v1136_v25 = vrot.slane %v1135_v24, 1 }
 0x64a   : > { %v1137_v26 = vadd.f32 %v1136_v25, %v1135_v24 }
 0x64c   : > { %v1138_v27 = vmul.f32 0.0625, %v1137_v26 }
 0x64e   : > { %v1139_v28 = vsub.f32 %v1123_v16, %v1138_v27  ;;  %v1140_v29 = vsub.f32 %v1128_v14, %v1138_v27 }
 0x650   : > { %v1141_v30 = vmul.f32 %v1139_v28, %v1139_v28  ;;  %v1142_v31 = vmul.f32 %v1140_v29, %v1140_v29 }
 0x652   : > { %v1143_v32 = vadd.f32 %v1142_v31, %v1141_v30 }
 0x654   : > { %v1144_v33 = vrot.slane %v1143_v32, 4 }
 0x656   : > { %v1145_v34 = vadd.f32 %v1144_v33, %v1143_v32 }
 0x658   : > { %v1146_v35 = vrot.slane %v1145_v34, 2 }
 0x65a   : > { %v1147_v36 = vadd.f32 %v1146_v35, %v1145_v34 }
 0x65c   : > { %v1148_v37 = vrot.slane %v1147_v36, 1 }
 0x65e   : > { %v1149_v38 = vadd.f32 %v1148_v37, %v1147_v36 }
 0x660   : > { %v1150_v39 = vmul.f32 0.0625, %v1149_v38 }
 0x662   : > { %v1151_v40 = vadd.f32 1e-05, %v1150_v39 }
 0x664   : > { %3175 = vrsqrt.f32 %v1151_v40 }
 0x66e   : > { %v3176_v44 = vpop.eup %3175 }
 0x66f   : > { %v1153_v46 = vmul.f32 %v3176_v44, %v1139_v28  ;;  %v1154_v47 = vmul.f32 %v3176_v44, %v1140_v29 }
 0x671   : > { %v1159_v48 = vmul.f32 %v1158_v43, %v1153_v46  ;;  %v1160_v49 = vmul.f32 %v1158_v43, %v1154_v47 }
 0x673   : > { %v1165_v52 = vadd.f32 %v1164_v45, %v1159_v48  ;;  %v1166_v53 = vadd.f32 %v1164_v45, %v1160_v49 }
 0x675   : > { %v1167_v54 = vmax.f32 %v1165_v52, 0.0  ;;  %v1168_v55 = vmax.f32 %v1166_v53, 0.0 }
 0x677   : > { %v3050_v56 = vpack.c.bf16 %v1168_v55, %v1167_v54 }
 0x679   : > { %3051 = vmatpush3.bf16.msra.mxu0 %v3050_v56 }
 0x67a   : > { %2883 = vmatprep.subr.bf16.mxu0 %v3447_v1 }
 0x67c   : > { %2861 = vmatmul.mubr.msk.f32.vlgmr.msra.gmra.mrb[10].mxu0 %vm586_vm0, %v1169_v57 }
 0x67d   : > { %2899 = vmatprep.mubr.msk.bf16.mxu0 %vm3448_vm1, %v3447_v1  ;;  %2884 = vmatpush3.bf16.msra.mxu0 %v3163_v23 }
 0x67e   : > { %2885 = vmatprep.subr.bf16.mxu0 %v3447_v1 }
 0x681   : > { %2886 = vmatpush3.bf16.msra.mxu0 %v3164_v58 }
 0x682   : > { %2887 = vmatprep.subr.bf16.mxu0 %v3447_v1 }
 0x685   : > { %2888 = vmatpush3.bf16.msra.mxu0 %v3165_v59 }
 0x686   : > { %2889 = vmatprep.subr.bf16.mxu0 %v3447_v1 }
 0x689   : > { %2890 = vmatpush3.bf16.msra.mxu0 %v3166_v60 }
 0x68a   : > { %2891 = vmatprep.subr.bf16.mxu0 %v3447_v1 }
 0x68d   : > { %2892 = vmatpush3.bf16.msra.mxu0 %v3167_v61 }
 0x68e   : > { %2893 = vmatprep.subr.bf16.mxu0 %v3447_v1 }
 0x691   : > { %2894 = vmatpush3.bf16.msra.mxu0 %v3168_v62 }
 0x692   : > { %2895 = vmatprep.subr.bf16.mxu0 %v3447_v1 }
 0x695   : > { %2896 = vmatpush3.bf16.msra.mxu0 %v3169_v3 }
 0x696   : > { %2897 = vmatprep.subr.bf16.mxu0 %v3447_v1 }
 0x699   : > { %2898 = vmatpush3.bf16.msra.mxu0 %v3170_v4 }
 0x74f   : > { %v1239_v63 = vpop.f32.mrb[10].mxu0 }
 0x750   : > { %v1243_v0 = vpack.c.bf16 %v1239_v63, %v1239_v63  ;;  %v2862_v2 = vpop.f32.mrb[11].mxu0 }
 0x752   : > { %2880 = vmatmul.mubr.bf16.vlgmr.msra.gmra.mrb[8].mxu1 %v1243_v0 }
 0x825   : > { %v1346_v11 = vpop.f32.mrb[8].mxu1 }
 0x826   : > { %v1347_v7 = vadd.f32 %v1346_v11, %v1263_v6  ;;  %v2881_v5 = vpop.f32.mrb[9].mxu1 }
 0x827   : > { %v1349_v8 = vpop.f32.mrb[10].mxu1 }
 0x828   : > { %v1352_v9 = vmax.f32 %v1347_v7, 0.0  ;;  %v2882_v10 = vpop.f32.mrb[11].mxu1 }
 0x82a   : > { %v1353_v12 = vpack.c.bf16 %v1352_v9, %v1352_v9 }
 0x82c   : > { %2900 = vmatmul.mubr.bf16.vlgmr.msra.gmra.mrb[12].mxu0 %v1353_v12 }
 0x8ff   : > { %v1456_v14 = vpop.f32.mrb[12].mxu0 }
 0x900   : > { %v1457_v15 = vadd.f32 %v1456_v14, %v1373_v13  ;;  %v2901_v1 = vpop.f32.mrb[13].mxu0 }
 0x901   : > { %v1459_v16 = vpop.f32.mrb[14].mxu0 }
 0x902   : > { %1462 = vst [vmem:[%s3734_s27] sm:$0x3] %v1457_v15  ;;  %v2902_v17 = vpop.f32.mrb[15].mxu0 }
 0x903 PF: > { %p2621_p10 = scmp.ne.s32.totalorder %s3533_s16, 1 }
 0x904   : > { %v1469_v50 = vld [vmem:[%s4111_s8] sm:$0xff] (!%p2621_p10)  ;;  %v1470_v18 = vld [vmem:[%s4111_s8 + $0x8] sm:$0xff] (!%p2621_p10)  ;;  %s4143_s15 = sld [smem:[#allocation18_spill]] (!%p2621_p10)  ;;  %v3450_v20 = vmov (!%p2621_p10), 0.0   ;;  %vm3451_vm2 = vmmov (!%p2621_p10), 0   ;;  %v1494_v49 = vlaneseq (!%p2621_p10)  ;;  %v3955_v56 = vld [vmem:[#allocation10] sm:$0xff] (!%p2621_p10) }
 0x905   : > { %1466 = sbr.rel (%p2621_p10) target bundleno = 4923 (0x133b), region = 108  ;;  %1471 = vadd.xlane.f32.xlu0 (!%p2621_p10), %v1469_v50  ;;  %2903 = vmatprep.subr.bf16.mxu0 (!%p2621_p10), %v3450_v20  ;;  %s4144_s20 = sld [smem:[#allocation17_spill]] (!%p2621_p10)  ;;  %vm1931_vm3 = vcmask (!%p2621_p10), 130048   ;;  %vm2192_vm4 = vcmask (!%p2621_p10), 1041409   ;;  %vm2413_vm5 = vcmask (!%p2621_p10), 1041408  }
 0x906   : > { %2923 = vmatprep.subr.bf16.mxu1 (!%p2621_p10), %v3450_v20  ;;  %2919 = vmatprep.mubr.msk.bf16.mxu0 (!%p2621_p10), %vm3451_vm2, %v3450_v20  ;;  %v3952_v54 = vshrl.u32 (!%p2621_p10), %v1494_v49, 7 }
 0x907   : > { %2939 = vmatprep.mubr.msk.bf16.mxu1 (!%p2621_p10), %vm3451_vm2, %v3450_v20 }
 0x908   : > { %v1496_v55 = vsub.s32 (!%p2621_p10), 0, %v3952_v54  ;;  %v1502_v58 = vsub.s32 (!%p2621_p10), 1, %v3952_v54  ;;  %v1573_v12 = vsub.s32 (!%p2621_p10), 2, %v3952_v54  ;;  %v1666_v13 = vsub.s32 (!%p2621_p10), 3, %v3952_v54 }
 0x909   : > { %1473 = vadd.xlane.f32.xlu0 (!%p2621_p10), %v1470_v18 }
 0x90a   : > { %v3177_v21 = vld [vmem:[%s4143_s15] sm:$0xff] (!%p2621_p10)   ;;  %v3179_v19 = vld [vmem:[%s4143_s15 + $0x8] sm:$0xff] (!%p2621_p10)   ;;  %v3181_v33 = vld [vmem:[%s4143_s15 + $0x10] sm:$0xff] (!%p2621_p10)   ;;  %v1497_v23 = vrot.slane (!%p2621_p10), %v3955_v56, %v1496_v55  ;;  %v1503_v62 = vrot.slane (!%p2621_p10), %v3955_v56, %v1502_v58  ;;  %v1574_v14 = vrot.slane (!%p2621_p10), %v3955_v56, %v1573_v12  ;;  %v1667_v15 = vrot.slane (!%p2621_p10), %v3955_v56, %v1666_v13 }
 0x90b   : > { %v3178_v51 = vld [vmem:[%s4143_s15 + $0x40] sm:$0xff] (!%p2621_p10)   ;;  %2904 = vmatpush3.bf16.msra.mxu0 (!%p2621_p10), %v3177_v21  ;;  %v3180_v32 = vld [vmem:[%s4143_s15 + $0x48] sm:$0xff] (!%p2621_p10)   ;;  %v3182_v34 = vld [vmem:[%s4143_s15 + $0x50] sm:$0xff] (!%p2621_p10)  }
 0x90c   : > { %2924 = vmatpush3.bf16.msra.mxu1 %v3178_v51  ;;  %2905 = vmatprep.subr.bf16.mxu0 %v3450_v20  ;;  %v3183_v35 = vld [vmem:[%s4143_s15 + $0x18] sm:$0xff]   ;;  %v3185_v37 = vld [vmem:[%s4143_s15 + $0x20] sm:$0xff]   ;;  %v3187_v39 = vld [vmem:[%s4143_s15 + $0x28] sm:$0xff]  }
 0x90d   : > { %2925 = vmatprep.subr.bf16.mxu1 %v3450_v20  ;;  %v3184_v36 = vld [vmem:[%s4143_s15 + $0x58] sm:$0xff]   ;;  %v3186_v38 = vld [vmem:[%s4143_s15 + $0x60] sm:$0xff]   ;;  %v3188_v40 = vld [vmem:[%s4143_s15 + $0x68] sm:$0xff]  }
 0x90e   : > { %v3189_v41 = vld [vmem:[%s4143_s15 + $0x30] sm:$0xff]   ;;  %v3191_v43 = vld [vmem:[%s4143_s15 + $0x38] sm:$0xff]   ;;  %v3193_v3 = vld [vmem:[%s4143_s15 + $0x80] sm:$0xff]  }
 0x90f   : > { %2906 = vmatpush3.bf16.msra.mxu0 %v3179_v19  ;;  %v3190_v42 = vld [vmem:[%s4143_s15 + $0x70] sm:$0xff]   ;;  %v3192_v44 = vld [vmem:[%s4143_s15 + $0x78] sm:$0xff]   ;;  %v3194_v6 = vld [vmem:[%s4143_s15 + $0x88] sm:$0xff]  }
 0x910   : > { %2907 = vmatprep.subr.bf16.mxu0 %v3450_v20  ;;  %2926 = vmatpush3.bf16.msra.mxu1 %v3180_v32  ;;  %v3195_v11 = vld [vmem:[%s4143_s15 + $0x90] sm:$0xff]   ;;  %v3196_v7 = vld [vmem:[%s4143_s15 + $0x98] sm:$0xff]   ;;  %v3197_v5 = vld [vmem:[%s4143_s15 + $0xa0] sm:$0xff]  }
 0x911   : > { %2927 = vmatprep.subr.bf16.mxu1 %v3450_v20  ;;  %v3198_v8 = vld [vmem:[%s4143_s15 + $0xa8] sm:$0xff]   ;;  %v3199_v9 = vld [vmem:[%s4143_s15 + $0xb0] sm:$0xff]   ;;  %v3200_v10 = vld [vmem:[%s4143_s15 + $0xb8] sm:$0xff]  }
 0x913   : > { %2908 = vmatpush3.bf16.msra.mxu0 %v3181_v33 }
 0x914   : > { %2928 = vmatpush3.bf16.msra.mxu1 %v3182_v34  ;;  %2909 = vmatprep.subr.bf16.mxu0 %v3450_v20 }
 0x915   : > { %2929 = vmatprep.subr.bf16.mxu1 %v3450_v20 }
 0x917   : > { %2910 = vmatpush3.bf16.msra.mxu0 %v3183_v35 }
 0x918   : > { %2930 = vmatpush3.bf16.msra.mxu1 %v3184_v36  ;;  %2911 = vmatprep.subr.bf16.mxu0 %v3450_v20 }
 0x919   : > { %2931 = vmatprep.subr.bf16.mxu1 %v3450_v20 }
 0x91b   : > { %2912 = vmatpush3.bf16.msra.mxu0 %v3185_v37 }
 0x91c   : > { %2932 = vmatpush3.bf16.msra.mxu1 %v3186_v38  ;;  %2913 = vmatprep.subr.bf16.mxu0 %v3450_v20 }
 0x91d   : > { %2933 = vmatprep.subr.bf16.mxu1 %v3450_v20 }
 0x91f   : > { %2914 = vmatpush3.bf16.msra.mxu0 %v3187_v39  ;;  %v1928_v39 = vld [vmem:[%s4144_s20 + $0x8] sm:$0xff] }
 0x920   : > { %2934 = vmatpush3.bf16.msra.mxu1 %v3188_v40  ;;  %2915 = vmatprep.subr.bf16.mxu0 %v3450_v20 }
 0x921   : > { %2935 = vmatprep.subr.bf16.mxu1 %v3450_v20 }
 0x923   : > { %2916 = vmatpush3.bf16.msra.mxu0 %v3189_v41 }
 0x924   : > { %2936 = vmatpush3.bf16.msra.mxu1 %v3190_v42  ;;  %2917 = vmatprep.subr.bf16.mxu0 %v3450_v20  ;;  %v1927_v42 = vld [vmem:[%s4144_s20] sm:$0xff] }
 0x925   : > { %2937 = vmatprep.subr.bf16.mxu1 %v3450_v20 }
 0x927   : > { %2918 = vmatpush3.bf16.msra.mxu0 %v3191_v43 }
 0x928   : > { %2938 = vmatpush3.bf16.msra.mxu1 %v3192_v44  ;;  %2943 = vmatprep.subr.bf16.mxu0 %v3450_v20 }
 0x992   : > { %v1472_v24 = vpop.xlane.xlu0 %1471 }
 0x993   : > { %v1476_v25 = vmul.f32 0.0078125, %v1472_v24 }
 0x995   : > { %v1478_v26 = vsub.f32 %v1469_v50, %v1476_v25 }
 0x996   : > { %v1474_v27 = vpop.xlane.xlu0 %1473 }
 0x997   : > { %v1477_v28 = vmul.f32 0.0078125, %v1474_v27  ;;  %v1480_v29 = vmul.f32 %v1478_v26, %v1478_v26 }
 0x999   : > { %v1479_v30 = vsub.f32 %v1470_v18, %v1477_v28  ;;  %1482 = vadd.xlane.f32.xlu1 %v1480_v29  ;;  %v1759_v29 = vsub.s32 4, %v3952_v54 }
 0x99b   : > { %v1481_v31 = vmul.f32 %v1479_v30, %v1479_v30 }
 0x99d   : > { %1484 = vadd.xlane.f32.xlu1 %v1481_v31 }
 0xa26   : > { %v1483_v45 = vpop.xlane.xlu1 %1482 }
 0xa27   : > { %v1486_v46 = vmul.f32 0.0078125, %v1483_v45 }
 0xa29   : > { %v1488_v47 = vadd.f32 1e-12, %v1486_v46 }
 0xa2a   : > { %v1485_v48 = vpop.xlane.xlu1 %1484 }
 0xa2b   : > { %3225 = vrsqrt.f32 %v1488_v47  ;;  %v1487_v52 = vmul.f32 0.0078125, %v1485_v48 }
 0xa2d   : > { %v1489_v53 = vadd.f32 1e-12, %v1487_v52 }
 0xa2f   : > { %3227 = vrsqrt.f32 %v1489_v53 }
 0xa35   : > { %v3226_v57 = vpop.eup %3225 }
 0xa36   : > { %v1492_v22 = vmul.f32 %v3226_v57, %v1478_v26 }
 0xa38   : > { %v1498_v61 = vmul.f32 %v1497_v23, %v1492_v22 }
 0xa39   : > { %v3228_v59 = vpop.eup %3227 }
 0xa3a   : > { %v1493_v60 = vmul.f32 %v3228_v59, %v1479_v30  ;;  %v3964_v0 = vadd.f32 %v1503_v62, %v1498_v61  ;;  %v1760_v30 = vrot.slane %v3955_v56, %v1759_v29 }
 0xa3c   : > { %v1499_v63 = vmul.f32 %v1497_v23, %v1493_v60 }
 0xa3e   : > { %v3966_v2 = vadd.f32 %v1503_v62, %v1499_v63 }
 0xa40   : > { %v1506_v4 = vpack.c.bf16 %v3966_v2, %v3964_v0 }
 0xa42   : > { %2920 = vmatmul.mubr.bf16.vlgmr.msra.gmra.mrb[0].mxu0 %v1506_v4  ;;  %2940 = vmatmul.mubr.bf16.vlgmr.msra.gmra.mrb[0].mxu1 %v1506_v4 }
 0xa43   : > { %2944 = vmatpush3.bf16.msra.mxu0 %v3193_v3  ;;  %2959 = vmatprep.mubr.msk.bf16.mxu0 %vm3451_vm2, %v3450_v20 }
 0xa44   : > { %2945 = vmatprep.subr.bf16.mxu0 %v3450_v20 }
 0xa47   : > { %2946 = vmatpush3.bf16.msra.mxu0 %v3194_v6 }
 0xa48   : > { %2947 = vmatprep.subr.bf16.mxu0 %v3450_v20 }
 0xa4b   : > { %2948 = vmatpush3.bf16.msra.mxu0 %v3195_v11  ;;  %v3201_v11 = vld [vmem:[%s4143_s15 + $0xc0] sm:$0xff]  }
 0xa4c   : > { %2949 = vmatprep.subr.bf16.mxu0 %v3450_v20 }
 0xa4f   : > { %2950 = vmatpush3.bf16.msra.mxu0 %v3196_v7 }
 0xa50   : > { %2951 = vmatprep.subr.bf16.mxu0 %v3450_v20 }
 0xa53   : > { %2952 = vmatpush3.bf16.msra.mxu0 %v3197_v5  ;;  %v3202_v5 = vld [vmem:[%s4143_s15 + $0xc8] sm:$0xff]  }
 0xa54   : > { %2953 = vmatprep.subr.bf16.mxu0 %v3450_v20 }
 0xa57   : > { %2954 = vmatpush3.bf16.msra.mxu0 %v3198_v8  ;;  %v3203_v8 = vld [vmem:[%s4143_s15 + $0xd0] sm:$0xff]  }
 0xa58   : > { %2955 = vmatprep.subr.bf16.mxu0 %v3450_v20 }
 0xa5b   : > { %2956 = vmatpush3.bf16.msra.mxu0 %v3199_v9  ;;  %v3204_v9 = vld [vmem:[%s4143_s15 + $0xd8] sm:$0xff]  }
 0xa5c   : > { %2957 = vmatprep.subr.bf16.mxu0 %v3450_v20 }
 0xa5f   : > { %2958 = vmatpush3.bf16.msra.mxu0 %v3200_v10  ;;  %v3205_v10 = vld [vmem:[%s4143_s15 + $0xe0] sm:$0xff]  }
 0xa62   : > { %2960 = vmatmul.mubr.bf16.vlgmr.msra.gmra.mrb[4].mxu0 %v1506_v4 }
 0xb15   : > { %v1657_v1 = vpop.f32.mrb[0].mxu0  ;;  %v1750_v16 = vpop.f32.mrb[0].mxu1 }
 0xb16   : > { %v1658_v17 = vadd.f32 %v1657_v1, %v1574_v14  ;;  %v2921_v50 = vpop.f32.mrb[1].mxu0  ;;  %v2941_v18 = vpop.f32.mrb[1].mxu1  ;;  %v1751_v19 = vadd.f32 %v1750_v16, %v1667_v15  ;;  %v3208_v1 = vld [vmem:[%s4143_s15 + $0xf8] sm:$0xff]  }
 0xb17   : > { %v1660_v21 = vpop.f32.mrb[2].mxu0  ;;  %v1753_v51 = vpop.f32.mrb[2].mxu1  ;;  %v2038_v18 = vsub.s32 5, %v3952_v54 }
 0xb18   : > { %v1754_v24 = vadd.f32 %v1753_v51, %v1667_v15  ;;  %v2922_v25 = vpop.f32.mrb[3].mxu0  ;;  %v2942_v26 = vpop.f32.mrb[3].mxu1  ;;  %2967 = vmatprep.mubr.f32.mxu0 %v1658_v17  ;;  %v1661_v28 = vadd.f32 %v1660_v21, %v1574_v14  ;;  %v3206_v14 = vld [vmem:[%s4143_s15 + $0xe8] sm:$0xff]   ;;  %v3207_v15 = vld [vmem:[%s4143_s15 + $0xf0] sm:$0xff]  }
 0xb19   : > { %v2039_v21 = vrot.slane %v3955_v56, %v2038_v18  ;;  %v3224_v18 = vld [vmem:[#allocation9 + $0x38] sm:$0xff]  }
 0xb1a   : > { %v3052_v27 = vpack.c.bf16 %v1754_v24, %v1751_v19 }
 0xb1c   : > { %3053 = vmatprep.subr.bf16.mxu0 %v3052_v27 }
 0xb1d   : > { %3055 = vmatpush3.bf16.xpose.msra.mxu0 %v3052_v27 }
 0xb1e   : > { %2997 = vmatprep.subr.bf16.mxu0 %v3450_v20 }
 0xb24   : > { %2968 = vmatmul.mubr.f32.vlgmr.msra.gmra.mrb[8].mxu0 %v1661_v28 }
 0xb25   : > { %3013 = vmatprep.mubr.msk.bf16.mxu0 %vm3451_vm2, %v3450_v20 }
 0xb35   : > { %v1843_v31 = vpop.f32.mrb[4].mxu0 }
 0xb36   : > { %v2961_v32 = vpop.f32.mrb[5].mxu0  ;;  %v1844_v34 = vadd.f32 %v1843_v31, %v1760_v30 }
 0xb37   : > { %v1846_v33 = vpop.f32.mrb[6].mxu0 }
 0xb38   : > { %v1847_v35 = vadd.f32 %v1846_v33, %v1760_v30  ;;  %v2962_v36 = vpop.f32.mrb[7].mxu0 }
 0xb3a   : > { %v3056_v37 = vpack.c.bf16 %v1847_v35, %v1844_v34 }
 0xb3c   : > { %3057 = vmatprep.subr.bf16.mxu1 %v3056_v37 }
 0xb3d   : > { %3059 = vmatpush3.bf16.msra.mxu1 %v3056_v37 }
 0xb3e   : > { %2977 = vmatprep.subr.bf16.mxu1 %v3450_v20 }
 0xbf7   : > { %v2969_v38 = vpop.f32.mrb[8].mxu0 }
 0xbf8   : > { %v1926_v40 = vmul.f32 0.088388346, %v2969_v38  ;;  %v1916_v41 = vpop.f32.mrb[9].mxu0  ;;  %v3209_v38 = vld [vmem:[#allocation7] sm:$0xff]  }
 0xbf9   : > { %v1925_v43 = vmul.f32 0.088388346, %v1916_v41  ;;  %2998 = vmatpush3.bf16.msra.mxu0 %v3209_v38  ;;  %v3214_v41 = vld [vmem:[#allocation7 + $0x28] sm:$0xff]  }
 0xbfa   : > { %v1930_v44 = vadd.f32 %v1928_v39, %v1926_v40  ;;  %2999 = vmatprep.subr.bf16.mxu0 %v3450_v20  ;;  %v3210_v39 = vld [vmem:[#allocation7 + $0x8] sm:$0xff]   ;;  %v3213_v40 = vld [vmem:[#allocation7 + $0x20] sm:$0xff]  }
 0xbfb   : > { %v1929_v45 = vadd.f32 %v1927_v42, %v1925_v43  ;;  %v3215_v42 = vld [vmem:[#allocation7 + $0x30] sm:$0xff]   ;;  %v3216_v43 = vld [vmem:[#allocation7 + $0x38] sm:$0xff]  }
 0xbfc   : > { %v1935_v46 = vsel %vm1931_vm3, %v1930_v44, -inf }
 0xbfd   : > { %1936 = vmax.xlane.f32.xlu1 %v1935_v46  ;;  %v1932_v47 = vsel %vm1931_vm3, %v1929_v45, -inf  ;;  %3000 = vmatpush3.bf16.msra.mxu0 %v3210_v39 }
 0xbfe   : > { %1933 = vmax.xlane.f32.xlu0 %v1932_v47  ;;  %3001 = vmatprep.subr.bf16.mxu0 %v3450_v20 }
 0xc8a   : > { %v1937_v48 = vpop.xlane.xlu1 %1936 }
 0xc8b   : > { %v1939_v49 = vsub.f32 %v1930_v44, %v1937_v48  ;;  %v1934_v52 = vpop.xlane.xlu0 %1933  ;;  %v3217_v44 = vld [vmem:[#allocation9] sm:$0xff]  }
 0xc8c   : > { %v1938_v53 = vsub.f32 %v1929_v45, %v1934_v52 }
 0xc8d   : > { %v1942_v57 = vmul.f32 1.442695, %v1939_v49 }
 0xc8e   : > { %v1940_v22 = vmul.f32 1.442695, %v1938_v53  ;;  %v2155_v53 = vsub.s32 6, %v3952_v54 }
 0xc8f   : > { %3229 = vpow2.f32 %v1942_v57  ;;  %v2161_v57 = vsub.s32 7, %v3952_v54 }
 0xc90   : > { %3231 = vpow2.f32 %v1940_v22  ;;  %v2156_v22 = vrot.slane %v3955_v56, %v2155_v53 }
 0xc99   : > { %v3230_v23 = vpop.eup %3229 }
 0xc9a   : > { %v3232_v59 = vpop.eup %3231  ;;  %v1947_v60 = vsel %vm1931_vm3, %v3230_v23, 0.0 }
 0xc9b   : > { %1948 = vadd.xlane.f32.xlu1 %v1947_v60  ;;  %v1944_v61 = vsel %vm1931_vm3, %v3232_v59, 0.0  ;;  %v2162_v60 = vrot.slane %v3955_v56, %v2161_v57  ;;  %v3219_v56 = vld [vmem:[#allocation9 + $0x10] sm:$0xff]  }
 0xc9c   : > { %1945 = vadd.xlane.f32.xlu0 %v1944_v61 }
 0xd28   : > { %v1949_v62 = vpop.xlane.xlu1 %1948 }
 0xd29   : > { %3233 = vrcp.f32 %v1949_v62  ;;  %v1946_v63 = vpop.xlane.xlu0 %1945 }
 0xd2a   : > { %3235 = vrcp.f32 %v1946_v63 }
 0xd33   : > { %v3234_v3 = vpop.eup %3233 }
 0xd34   : > { %v3236_v4 = vpop.eup %3235  ;;  %v1953_v7 = vmul.f32 %v3234_v3, %v3230_v23 }
 0xd35   : > { %v1951_v6 = vmul.f32 %v3236_v4, %v3232_v59 }
 0xd37   : > { %2974 = vmatprep.mubr.msk.f32.mxu1 %vm1931_vm3, %v1951_v6 }
 0xd38   : > { %2975 = vmatmul.mubr.msk.f32.vlgmr.msra.gmra.mrb[4].mxu1 %vm1931_vm3, %v1953_v7 }
 0xd39   : > { %2978 = vmatpush3.bf16.msra.mxu1 %v3201_v11  ;;  %2993 = vmatprep.mubr.msk.bf16.mxu1 %vm3451_vm2, %v3450_v20 }
 0xd3a   : > { %2979 = vmatprep.subr.bf16.mxu1 %v3450_v20 }
 0xd3d   : > { %2980 = vmatpush3.bf16.msra.mxu1 %v3202_v5 }
 0xd3e   : > { %2981 = vmatprep.subr.bf16.mxu1 %v3450_v20 }
 0xd41   : > { %2982 = vmatpush3.bf16.msra.mxu1 %v3203_v8 }
 0xd42   : > { %2983 = vmatprep.subr.bf16.mxu1 %v3450_v20 }
 0xd45   : > { %2984 = vmatpush3.bf16.msra.mxu1 %v3204_v9 }
 0xd46   : > { %2985 = vmatprep.subr.bf16.mxu1 %v3450_v20 }
 0xd49   : > { %2986 = vmatpush3.bf16.msra.mxu1 %v3205_v10 }
 0xd4a   : > { %2987 = vmatprep.subr.bf16.mxu1 %v3450_v20 }
 0xd4d   : > { %2988 = vmatpush3.bf16.msra.mxu1 %v3206_v14 }
 0xd4e   : > { %2989 = vmatprep.subr.bf16.mxu1 %v3450_v20 }
 0xd51   : > { %2990 = vmatpush3.bf16.msra.mxu1 %v3207_v15  ;;  %v3218_v15 = vld [vmem:[#allocation9 + $0x8] sm:$0xff]  }
 0xd52   : > { %2991 = vmatprep.subr.bf16.mxu1 %v3450_v20 }
 0xd55   : > { %2992 = vmatpush3.bf16.msra.mxu1 %v3208_v1  ;;  %v3220_v1 = vld [vmem:[#allocation9 + $0x18] sm:$0xff]  }
 0xd56   : > { %3017 = vmatprep.subr.bf16.mxu1 %v3450_v20 }
 0xe0b   : > { %v2976_v16 = vpop.f32.mrb[4].mxu1 }
 0xe0c   : > { %v2026_v17 = vpop.f32.mrb[5].mxu1 }
 0xe0d   : > { %v2035_v50 = vpack.c.bf16 %v2976_v16, %v2026_v17  ;;  %v3221_v16 = vld [vmem:[#allocation9 + $0x20] sm:$0xff]   ;;  %v3222_v17 = vld [vmem:[#allocation9 + $0x28] sm:$0xff]  }
 0xe0f   : > { %2994 = vmatmul.mubr.bf16.vlgmr.msra.gmra.mrb[8].mxu1 %v2035_v50  ;;  %v3223_v50 = vld [vmem:[#allocation9 + $0x30] sm:$0xff]  }
 0xe10   : > { %3033 = vmatprep.mubr.msk.bf16.mxu1 %vm3451_vm2, %v3450_v20  ;;  %3018 = vmatpush3.bf16.msra.mxu1 %v3217_v44 }
 0xe11   : > { %3019 = vmatprep.subr.bf16.mxu1 %v3450_v20 }
 0xe14   : > { %3020 = vmatpush3.bf16.msra.mxu1 %v3218_v15 }
 0xe15   : > { %3021 = vmatprep.subr.bf16.mxu1 %v3450_v20 }
 0xe18   : > { %3022 = vmatpush3.bf16.msra.mxu1 %v3219_v56 }
 0xe19   : > { %3023 = vmatprep.subr.bf16.mxu1 %v3450_v20 }
 0xe1c   : > { %3024 = vmatpush3.bf16.msra.mxu1 %v3220_v1 }
 0xe1d   : > { %3025 = vmatprep.subr.bf16.mxu1 %v3450_v20 }
 0xe20   : > { %3026 = vmatpush3.bf16.msra.mxu1 %v3221_v16 }
 0xe21   : > { %3027 = vmatprep.subr.bf16.mxu1 %v3450_v20 }
 0xe24   : > { %3028 = vmatpush3.bf16.msra.mxu1 %v3222_v17 }
 0xe25   : > { %3029 = vmatprep.subr.bf16.mxu1 %v3450_v20 }
 0xe28   : > { %3030 = vmatpush3.bf16.msra.mxu1 %v3223_v50 }
 0xe29   : > { %3031 = vmatprep.subr.bf16.mxu1 %v3450_v20 }
 0xe2c   : > { %3032 = vmatpush3.bf16.msra.mxu1 %v3224_v18 }
 0xee2   : > { %v2122_v51 = vpop.f32.mrb[8].mxu1 }
 0xee3   : > { %v2123_v19 = vadd.f32 %v2122_v51, %v2039_v21  ;;  %v2995_v24 = vpop.f32.mrb[9].mxu1 }
 0xee4   : > { %v2125_v25 = vpop.f32.mrb[10].mxu1 }
 0xee5   : > { %v2126_v26 = vadd.f32 %v2125_v25, %v2039_v21  ;;  %v2996_v27 = vpop.f32.mrb[11].mxu1  ;;  %v2129_v28 = vadd.f32 %v2123_v19, %v3964_v0  ;;  %v3211_v0 = vld [vmem:[#allocation7 + $0x10] sm:$0xff]   ;;  %v1468_v21 = vld [vmem:[#allocation10 + $0x8] sm:$0xf] }
 0xee6   : > { %3002 = vmatpush3.bf16.msra.mxu0 %v3211_v0  ;;  %v2186_v51 = vrot.slane %v1468_v21, %v1496_v55  ;;  %v2313_v55 = vrot.slane %v1468_v21, %v1502_v58 }
 0xee7   : > { %2131 = vadd.xlane.f32.xlu1 %v2129_v28  ;;  %v2130_v29 = vadd.f32 %v2126_v26, %v3966_v2  ;;  %3003 = vmatprep.subr.bf16.mxu0 %v3450_v20  ;;  %v3212_v2 = vld [vmem:[#allocation7 + $0x18] sm:$0xff]  }
 0xee9   : > { %2133 = vadd.xlane.f32.xlu0 %v2130_v29 }
 0xeea   : > { %3004 = vmatpush3.bf16.msra.mxu0 %v3212_v2 }
 0xeeb   : > { %3005 = vmatprep.subr.bf16.mxu0 %v3450_v20 }
 0xeee   : > { %3006 = vmatpush3.bf16.msra.mxu0 %v3213_v40 }
 0xeef   : > { %3007 = vmatprep.subr.bf16.mxu0 %v3450_v20 }
 0xef2   : > { %3008 = vmatpush3.bf16.msra.mxu0 %v3214_v41 }
 0xef3   : > { %3009 = vmatprep.subr.bf16.mxu0 %v3450_v20 }
 0xef6   : > { %3010 = vmatpush3.bf16.msra.mxu0 %v3215_v42 }
 0xef7   : > { %3011 = vmatprep.subr.bf16.mxu0 %v3450_v20 }
 0xefa   : > { %3012 = vmatpush3.bf16.msra.mxu0 %v3216_v43 }
 0xf74   : > { %v2132_v30 = vpop.xlane.xlu1 %2131 }
 0xf75   : > { %v2135_v31 = vmul.f32 0.0078125, %v2132_v30 }
 0xf76   : > { %v2134_v32 = vpop.xlane.xlu0 %2133 }
 0xf77   : > { %v2137_v33 = vsub.f32 %v2129_v28, %v2135_v31  ;;  %v2136_v34 = vmul.f32 0.0078125, %v2134_v32 }
 0xf79   : > { %v2138_v35 = vsub.f32 %v2130_v29, %v2136_v34  ;;  %v2139_v36 = vmul.f32 %v2137_v33, %v2137_v33 }
 0xf7b   : > { %2141 = vadd.xlane.f32.xlu1 %v2139_v36  ;;  %v2140_v37 = vmul.f32 %v2138_v35, %v2138_v35 }
 0xf7d   : > { %2143 = vadd.xlane.f32.xlu0 %v2140_v37 }
0x1008   : > { %v2142_v45 = vpop.xlane.xlu1 %2141 }
0x1009   : > { %v2145_v46 = vmul.f32 0.0078125, %v2142_v45 }
0x100a   : > { %v2144_v47 = vpop.xlane.xlu0 %2143 }
0x100b   : > { %v2147_v48 = vadd.f32 1e-12, %v2145_v46  ;;  %v2146_v49 = vmul.f32 0.0078125, %v2144_v47 }
0x100d   : > { %3237 = vrsqrt.f32 %v2147_v48  ;;  %v2148_v52 = vadd.f32 1e-12, %v2146_v49 }
0x100f   : > { %3239 = vrsqrt.f32 %v2148_v52 }
0x1017   : > { %v3238_v23 = vpop.eup %3237 }
0x1018   : > { %v2151_v59 = vmul.f32 %v3238_v23, %v2137_v33 }
0x1019   : > { %v3240_v61 = vpop.eup %3239 }
0x101a   : > { %v2157_v62 = vmul.f32 %v2156_v22, %v2151_v59  ;;  %v2152_v63 = vmul.f32 %v3240_v61, %v2138_v35 }
0x101c   : > { %v2158_v3 = vmul.f32 %v2156_v22, %v2152_v63  ;;  %v2163_v4 = vadd.f32 %v2162_v60, %v2157_v62  ;;  %v2446_v63 = vrot.slane %v1468_v21, %v1573_v12 }
0x101e   : > { %v2164_v6 = vadd.f32 %v2162_v60, %v2158_v3  ;;  %v2165_v11 = vpack.c.bf16 %v2163_v4, %v2163_v4 }
0x1020   : > { %v2166_v7 = vpack.c.bf16 %v2164_v6, %v2164_v6  ;;  %v2189_v8 = vunpack.c.l.b16 %v2165_v11  ;;  %v2452_v11 = vrot.slane %v1468_v21, %v1666_v13 }
0x1022   : > { %v2190_v5 = vunpack.c.l.b16 %v2166_v7 }
0x1024   : > { %v2191_v9 = vrot.slane %v2190_v5, 7 }
0x1026   : > { %v2193_v10 = vsel %vm2192_vm4, %v2191_v9, %v2189_v8 }
0x1027   : > { %v2194_v14 = vpack.c.b16 %v2193_v10, %v2193_v10 }
0x1029   : > { %3014 = vmatmul.mubr.bf16.vlgmr.msra.gmra.mrb[12].mxu0 %v2194_v14 }
0x10fc   : > { %v2278_v19 = vpop.f32.mrb[12].mxu0 }
0x10fd   : > { %v2279_v24 = vadd.f32 %v2278_v19, %v2186_v51  ;;  %v3015_v25 = vpop.f32.mrb[13].mxu0 }
0x10fe   : > { %v2281_v26 = vpop.f32.mrb[14].mxu0 }
0x10ff   : > { %v2285_v27 = vmul.f32 0.044715, %v2279_v24  ;;  %v3016_v28 = vpop.f32.mrb[15].mxu0  ;;  %v2284_v34 = vmul.f32 0.5, %v2279_v24 }
0x1101   : > { %v2286_v29 = vmul.f32 %v2285_v27, %v2279_v24 }
0x1103   : > { %v2287_v30 = vmul.f32 %v2286_v29, %v2279_v24 }
0x1105   : > { %v2288_v31 = vadd.f32 %v2287_v30, %v2279_v24 }
0x1107   : > { %v2289_v32 = vmul.f32 0.7978846, %v2288_v31 }
0x1109   : > { %3241 = vtanh.f32 %v2289_v32 }
0x1113   : > { %v3242_v33 = vpop.eup %3241 }
0x1114   : > { %v2291_v35 = vadd.f32 1.0, %v3242_v33 }
0x1116   : > { %v2292_v20 = vmul.f32 %v2291_v35, %v2284_v34 }
0x1118   : > { %v2293_v36 = vpack.c.bf16 %v2292_v20, %v2292_v20 }
0x111a   : > { %3034 = vmatmul.mubr.bf16.vlgmr.msra.gmra.mrb[12].mxu1 %v2293_v36 }
0x11ed   : > { %v2396_v37 = vpop.f32.mrb[12].mxu1 }
0x11ee   : > { %v2397_v38 = vadd.f32 %v2396_v37, %v2313_v55  ;;  %v3035_v39 = vpop.f32.mrb[13].mxu1 }
0x11ef   : > { %v2399_v0 = vpop.f32.mrb[14].mxu1 }
0x11f0   : > { %v2403_v2 = vrot.slane %v2397_v38, 1  ;;  %v3036_v40 = vpop.f32.mrb[15].mxu1  ;;  %v2406_v42 = vadd.f32 %v2397_v38, %v2163_v4 }
0x11f2   : > { %v2407_v41 = vadd.f32 %v2403_v2, %v2164_v6 }
0x11f4   : > { %v2410_v43 = vrot.slane %v2407_v41, 7 }
0x11f6   : > { %v2411_v44 = vsel %vm2192_vm4, %v2410_v43, %v2406_v42 }
0x11f7   : > { %v2414_v45 = vsel %vm2413_vm5, %v2411_v44, 0.0 }
0x11f8   : > { %2415 = vadd.xlane.f32.xlu0 %v2414_v45 }
0x1285   : > { %v2416_v46 = vpop.xlane.xlu0 %2415 }
0x1286   : > { %v2417_v47 = vmul.f32 0.0078125, %v2416_v46 }
0x1288   : > { %v2419_v48 = vrot.slane %v2417_v47, 1  ;;  %v2422_v49 = vsub.f32 %v2406_v42, %v2417_v47 }
0x128a   : > { %v2423_v52 = vsub.f32 %v2407_v41, %v2419_v48  ;;  %v2424_v53 = vmul.f32 %v2422_v49, %v2422_v49 }
0x128c   : > { %v2425_v58 = vmul.f32 %v2423_v52, %v2423_v52 }
0x128e   : > { %v2428_v57 = vrot.slane %v2425_v58, 7 }
0x1290   : > { %v2429_v22 = vsel %vm2192_vm4, %v2428_v57, %v2424_v53 }
0x1291   : > { %v2431_v23 = vsel %vm2413_vm5, %v2429_v22, 0.0 }
0x1292   : > { %2432 = vadd.xlane.f32.xlu1 %v2431_v23 }
0x131f   : > { %v2433_v59 = vpop.xlane.xlu1 %2432 }
0x1320   : > { %v2434_v60 = vmul.f32 0.0078125, %v2433_v59 }
0x1322   : > { %v2435_v61 = vadd.f32 1e-12, %v2434_v60 }
0x1324   : > { %3243 = vrsqrt.f32 %v2435_v61 }
0x132e   : > { %v3244_v62 = vpop.eup %3243 }
0x132f   : > { %v2438_v3 = vrot.slane %v3244_v62, 1  ;;  %v2441_v4 = vmul.f32 %v3244_v62, %v2422_v49 }
0x1331   : > { %v2442_v6 = vmul.f32 %v2438_v3, %v2423_v52  ;;  %v2447_v7 = vmul.f32 %v2446_v63, %v2441_v4 }
0x1333   : > { %v2448_v5 = vmul.f32 %v2446_v63, %v2442_v6  ;;  %v2453_v9 = vadd.f32 %v2452_v11, %v2447_v7 }
0x1335   : > { %v2454_v8 = vadd.f32 %v2452_v11, %v2448_v5 }
0x1337   : > { %v2457_v10 = vrot.slane %v2454_v8, 7 }
0x1339   : > { %v2458_v14 = vsel %vm2192_vm4, %v2457_v10, %v2453_v9 }
0x133a   : > { %2460 = vst [vmem:[%s3734_s27] sm:$0x3] %v2458_v14 }
0x133b PF: > { %s4145_s26 = sld [smem:[#allocation16_spill]] }
0x1341   : > { %s28_s29 = sadd.s32 1, %s4145_s26  }
0x1342   : > { %p25_p11 = scmp.ge.s32.totalorder %s28_s29, 4  }
0x1344   :  { %27 = sbr.rel (!%p25_p11) target bundleno = 7 (0x7), region = 136 }
0x134b   :  { %2480 = vsyncpa [#allocation3], 1 }
0x134c   :  { %2482 = vsyncpa [#allocation3 + $0x1], 1 }
0x134d   :  { %2483 = vsyncpa [#allocation5], 1 }
0x134e   :  { %2484 = vsyncpa [#allocation8], 1 }
0x134f   :  { %2485 = vsyncpa [#allocation11], 1 }

</bundles_post_ra>
